<compile_context>
chip_gen: v7x
topology: tpu7x:2x2x1
jax: 0.10.0
libtpu: 0.0.40
codegen_flags: <defaults>
</compile_context>

<pallas_src>
import jax
import jax.numpy as jnp
from jax.experimental import pallas as pl
from jax.experimental.pallas import tpu as pltpu

EPS = 1e-5
_PAD = 8  # sublane-aligned start of the residual rows in the padded conv3 output


# ---------------------------------------------------------------------------
# Pallas kernel factory: three fused 1x1 conv1d (= per-point channel matmuls),
# BN pre-folded into the weights, ReLU, then vote offset / residual assembly.
# ---------------------------------------------------------------------------
def _make_voting_kernel(c, compute_dtype):
    def kernel(xy_ref, feat_ref,
               w1_ref, b1_ref,
               w2_ref, b2_ref,
               w3_ref, b3_ref,
               vote_xy_ref, vote_feat_ref):
        x = feat_ref[0]          # (C, TN)  seed features for this (batch, N-tile)
        xy = xy_ref[0]           # (3, TN)  seed xyz (transposed)

        # conv1 (1x1, BN folded) -> relu
        h = jnp.dot(w1_ref[...], x.astype(compute_dtype),
                    preferred_element_type=jnp.float32) + b1_ref[...]
        h = jnp.maximum(h, 0.0)

        # conv2 (1x1, BN folded) -> relu
        h = jnp.dot(w2_ref[...], h.astype(compute_dtype),
                    preferred_element_type=jnp.float32) + b2_ref[...]
        h = jnp.maximum(h, 0.0)

        # conv3 (1x1), output rows padded to (8 + C): row 0 is zero (x channel
        # passes through), rows 1:3 are the y/z offsets, rows 8:8+C residuals.
        h = jnp.dot(w3_ref[...], h.astype(compute_dtype),
                    preferred_element_type=jnp.float32) + b3_ref[...]

        vote_xy_ref[0] = (xy + h[0:3, :]).astype(vote_xy_ref.dtype)
        vote_feat_ref[0] = (x.astype(jnp.float32)
                            + h[_PAD:_PAD + c, :]).astype(vote_feat_ref.dtype)

    return kernel


# ---------------------------------------------------------------------------
# Generation-aware resource query (safe fallbacks if introspection fails)
# ---------------------------------------------------------------------------
def _tpu_resources():
    kind = ""
    try:
        kind = jax.devices()[0].device_kind.lower()
    except Exception:
        pass
    vmem = None
    try:
        vmem = int(pltpu.get_tpu_info().vmem_capacity_bytes)
    except Exception:
        vmem = None

    if "v7" in kind:
        gen, cores, default_vmem = "v7x", 2, 64 << 20
    elif "v6" in kind:
        gen, cores, default_vmem = "v6e", 1, 128 << 20
    elif "v5" in kind:
        gen, cores, default_vmem = "v5e", 1, 128 << 20
    else:
        gen, cores, default_vmem = "unknown", 1, 64 << 20   # conservative

    if vmem is None:
        vmem = default_vmem
    return {"generation": gen, "cores": cores, "vmem_bytes": vmem}


# ---------------------------------------------------------------------------
# Wrapper
# ---------------------------------------------------------------------------
def voting_module_forward(seed_xy, seed_features, params, *,
                          tile_n=None, use_bf16_matmul=None,
                          vote_feature_dtype=None):
    """seed_xy: (B, N, 3); seed_features: (B, C, N).

    params: dict produced by prepare_kernel_params() (BN folded, W3 padded).
    """
    B, N, _ = seed_xy.shape
    C = seed_features.shape[1]

    res = _tpu_resources()

    # bf16 MXU operands (f32 accumulation) once the contraction is big enough;
    # v5e's much slower MXU goes compute-bound earlier, so its gate is lower.
    if use_bf16_matmul is None:
        use_bf16_matmul = C >= (64 if res["generation"] == "v5e" else 128)
    compute_dtype = jnp.bfloat16 if use_bf16_matmul else jnp.float32
    wbytes = 2 if use_bf16_matmul else 4

    if vote_feature_dtype is None:
        vote_feature_dtype = seed_features.dtype

    # ---- corrected VMEM estimate (bytes) for a given lane tile --------------
    def vmem_estimate(tn, single_buffer_weights=True):
        xy_rows = 8                                    # (1,3,tn) pads sublane 3 -> 8
        tiles = 2 * 2 * (xy_rows + C) * tn * 4         # double-buffered in + out tiles
        interm = 3 * (_PAD + C) * tn * 4               # live f32 matmul intermediates
        w = (2 * C * C + (_PAD + C) * C) * wbytes      # weights in compute dtype
        b = (2 * C + (_PAD + C)) * 128 * 4             # (.,1) biases lane-pad to 128
        nbuf = 1 if single_buffer_weights else 2
        return tiles + interm + nbuf * (w + b)

    # Generation-aware tile budget: ~24 MiB on v7x (64 MiB VMEM), ~48 MiB on
    # v5e/v6e (128 MiB VMEM).
    budget = min(res["vmem_bytes"] * 3 // 8, 48 << 20)

    # ---- tile selection: biggest lane tile dividing N that fits the budget --
    if tile_n is None:
        candidates = [c for c in (4096, 2048, 1024, 512, 256, 128)
                      if c <= N and N % c == 0]
        if not candidates:
            candidates = [N]        # non-multiple-of-128 N: full-extent lane block
        fitting = [c for c in candidates if vmem_estimate(c) <= budget]
        tile_n = max(fitting) if fitting else min(candidates)
        # Multi-TensorCore chips (v7x): keep >= 2 steps along a parallel axis.
        if res["cores"] >= 2 and B == 1 and N // tile_n < 2:
            smaller = [c for c in candidates if N // c >= 2]
            if smaller:
                tile_n = max(smaller)
    assert N % tile_n == 0, "tile_n must divide num_seed"

    # Explicit scoped-VMEM limit (worst case: weights fall back to 2 buffers),
    # clamped to physical capacity minus headroom.
    est = vmem_estimate(tile_n, single_buffer_weights=False)
    vmem_limit = int(max(min(res["vmem_bytes"] - (8 << 20),
                             max(est + (8 << 20), 32 << 20)),
                         16 << 20))

    xy_t = jnp.transpose(seed_xy, (0, 2, 1)).astype(jnp.float32)    # (B, 3, N)
    feats = seed_features                                           # keep caller dtype

    w1 = params["w1"].astype(compute_dtype)
    w2 = params["w2"].astype(compute_dtype)
    w3 = params["w3"].astype(compute_dtype)
    b1, b2, b3 = params["b1"], params["b2"], params["b3"]           # stay f32

    out_shape = (
        jax.ShapeDtypeStruct((B, 3, N), jnp.float32),
        jax.ShapeDtypeStruct((B, C, N), vote_feature_dtype),
    )
    kernel = _make_voting_kernel(C, compute_dtype)
    cparams = pltpu.CompilerParams(
        dimension_semantics=("parallel", "parallel"),
        vmem_limit_bytes=vmem_limit)

    def call(single_buffer_weights):
        # Grid-constant weights: single-buffer them (the block index never
        # changes, so double-buffering only doubles their VMEM footprint).
        wkw = {"pipeline_mode": pl.Buffered(1)} if single_buffer_weights else {}

        def const_spec(shape):
            return pl.BlockSpec(shape, lambda b, n: (0, 0), **wkw)

        in_specs = [
            pl.BlockSpec((1, 3, tile_n), lambda b, n: (b, 0, n)),    # seed_xy_t
            pl.BlockSpec((1, C, tile_n), lambda b, n: (b, 0, n)),    # seed_features
            const_spec((C, C)), const_spec((C, 1)),                  # W1', b1'
            const_spec((C, C)), const_spec((C, 1)),                  # W2', b2'
            const_spec((_PAD + C, C)), const_spec((_PAD + C, 1)),    # W3 (pad), b3
        ]
        out_specs = (
            pl.BlockSpec((1, 3, tile_n), lambda b, n: (b, 0, n)),    # vote_xy_t
            pl.BlockSpec((1, C, tile_n), lambda b, n: (b, 0, n)),    # vote_features
        )
        return pl.pallas_call(
            kernel,
            grid=(B, N // tile_n),
            in_specs=in_specs,
            out_specs=out_specs,
            out_shape=out_shape,
            compiler_params=cparams,
        )(xy_t, feats, w1, b1, w2, b2, w3, b3)

    try:
        vote_xy_t, vote_features = call(True)
    except Exception:
        # Fallback if the installed Pallas rejects buffer_count=1 on inputs.
        vote_xy_t, vote_features = call(False)

    vote_xy = jnp.transpose(vote_xy_t, (0, 2, 1))                    # (B, N, 3)
    return vote_xy, vote_features                                    # (B, C, N)


# ---------------------------------------------------------------------------
# Deterministic parameter construction (synthetic, matches __init__ shapes)
# ---------------------------------------------------------------------------
def make_raw_params(key, in_dim, vote_factor=1):
    out3 = (2 + in_dim) * vote_factor
    ks = jax.random.split(key, 16)

    def conv_w(k, co, ci):
        # PyTorch Conv1d weight is (co, ci, 1) -> squeeze kernel dim
        return jax.random.normal(k, (co, ci), jnp.float32) * 0.1

    raw = dict(
        w1=conv_w(ks[0], in_dim, in_dim),
        b1=jax.random.normal(ks[1], (in_dim,), jnp.float32) * 0.1,
        w2=conv_w(ks[2], in_dim, in_dim),
        b2=jax.random.normal(ks[3], (in_dim,), jnp.float32) * 0.1,
        w3=conv_w(ks[4], out3, in_dim),
        b3=jax.random.normal(ks[5], (out3,), jnp.float32) * 0.1,
        g1=jax.random.uniform(ks[6], (in_dim,), jnp.float32, 0.5, 1.5),
        be1=jax.random.normal(ks[7], (in_dim,), jnp.float32) * 0.1,
        m1=jax.random.normal(ks[8], (in_dim,), jnp.float32) * 0.1,
        v1=jax.random.uniform(ks[9], (in_dim,), jnp.float32, 0.5, 1.5),
        g2=jax.random.uniform(ks[10], (in_dim,), jnp.float32, 0.5, 1.5),
        be2=jax.random.normal(ks[11], (in_dim,), jnp.float32) * 0.1,
        m2=jax.random.normal(ks[12], (in_dim,), jnp.float32) * 0.1,
        v2=jax.random.uniform(ks[13], (in_dim,), jnp.float32, 0.5, 1.5),
    )
    return raw


def prepare_kernel_params(raw):
    """Fold BN into conv1/conv2 and pad conv3's output rows to sublane alignment."""
    C = raw["w1"].shape[0]

    # BatchNorm (inference) as per-channel affine folded into the conv:
    #   s*(W x + b) + t  ==  (s*W) x + (s*b + t)
    s1 = raw["g1"] / jnp.sqrt(raw["v1"] + EPS)
    t1 = raw["be1"] - s1 * raw["m1"]
    s2 = raw["g2"] / jnp.sqrt(raw["v2"] + EPS)
    t2 = raw["be2"] - s2 * raw["m2"]

    w1f = raw["w1"] * s1[:, None]
    b1f = s1 * raw["b1"] + t1
    w2f = raw["w2"] * s2[:, None]
    b2f = s2 * raw["b2"] + t2

    # Pad W3: row 0 zero (x passthrough), rows 1:3 = y/z offset rows,
    # rows 3:8 zero, rows 8:8+C = residual rows.
    w3p = jnp.zeros((_PAD + C, C), jnp.float32)
    w3p = w3p.at[1:3, :].set(raw["w3"][0:2, :])
    w3p = w3p.at[_PAD:, :].set(raw["w3"][2:, :])
    b3p = jnp.zeros((_PAD + C,), jnp.float32)
    b3p = b3p.at[1:3].set(raw["b3"][0:2])
    b3p = b3p.at[_PAD:].set(raw["b3"][2:])

    col = lambda v: v.reshape(-1, 1)
    return dict(
        w1=w1f, b1=col(b1f),
        w2=w2f, b2=col(b2f),
        w3=w3p, b3=col(b3p),
    )


# ---------------------------------------------------------------------------
# Pure-JAX reference (mirrors the PyTorch forward with vote_factor = 1)
# ---------------------------------------------------------------------------
def reference_forward(seed_xy, seed_features, raw):
    B, N, _ = seed_xy.shape
    C = seed_features.shape[1]

    def bn(x, g, be, m, v):
        return (x - m[None, :, None]) / jnp.sqrt(v[None, :, None] + EPS) \
            * g[None, :, None] + be[None, :, None]

    def conv1x1(x, w, b):
        return jnp.einsum("oc,bcn->bon", w, x) + b[None, :, None]

    net = jnp.maximum(bn(conv1x1(seed_features, raw["w1"], raw["b1"]),
                         raw["g1"], raw["be1"], raw["m1"], raw["v1"]), 0.0)
    net = jnp.maximum(bn(conv1x1(net, raw["w2"], raw["b2"]),
                         raw["g2"], raw["be2"], raw["m2"], raw["v2"]), 0.0)
    net = conv1x1(net, raw["w3"], raw["b3"])                         # (B, 2+C, N)

    net = jnp.transpose(net, (0, 2, 1)).reshape(B, N, 1, 2 + C)
    offset = net[:, :, :, 0:2]
    vote_xy = seed_xy[:, :, None, :]
    vote_xy = vote_xy.at[:, :, :, 1:].add(offset)
    vote_xy = vote_xy.reshape(B, N, 3)

    residual = net[:, :, :, 2:]
    vote_features = jnp.transpose(seed_features, (0, 2, 1))[:, :, None, :] + residual
    vote_features = jnp.transpose(vote_features.reshape(B, N, C), (0, 2, 1))
    return vote_xy, vote_features


if __name__ == "__main__":
    # Small shapes: batch=2, seed_feature_dim=32, num_seed=512, vote_factor=1.
    # (Production VoteNet shapes — C=256, N>=1024, B>=8 — are where the tiling /
    #  dtype levers matter; this size only validates correctness + plumbing.)
    B, C, N = 2, 32, 512
    key = jax.random.PRNGKey(0)
    k_xy, k_feat, k_par = jax.random.split(key, 3)

    seed_xy = jax.random.normal(k_xy, (B, N, 3), jnp.float32)
    seed_features = jax.random.normal(k_feat, (B, C, N), jnp.float32)

    raw_params = make_raw_params(k_par, C, vote_factor=1)
    kernel_params = prepare_kernel_params(raw_params)

    ref_xy, ref_feat = reference_forward(seed_xy, seed_features, raw_params)

    # 1) default (f32 everywhere at this size)
    vote_xy, vote_features = jax.block_until_ready(
        voting_module_forward(seed_xy, seed_features, kernel_params))
    assert vote_xy.shape == (B, N, 3)
    assert vote_features.shape == (B, C, N)
    assert jnp.allclose(vote_xy, ref_xy, rtol=1e-5, atol=1e-4)
    assert jnp.allclose(vote_features, ref_feat, rtol=1e-5, atol=1e-4)

    # 2) force the bf16-MXU-operand path (auto-enabled at large C) so the
    #    reduced-precision matmul route is actually validated.
    bxy, bfeat = jax.block_until_ready(
        voting_module_forward(seed_xy, seed_features, kernel_params,
                              use_bf16_matmul=True))
    assert jnp.allclose(bxy, ref_xy, rtol=5e-2, atol=5e-2)
    assert jnp.allclose(bfeat, ref_feat, rtol=5e-2, atol=5e-2)

    # TODO(synk): vote_factor > 1 path (and the unused conv4 branch) are not
    # implemented because the PyTorch forward itself only type-checks for
    # vote_factor == 1.

    print("KERNEL_OK")
</pallas_src>

<mosaic_0001>
module attributes {stable_mosaic.version = 11 : i64} {
  func.func @kernel(%arg0: i32, %arg1: i32, %arg2: memref<1x3x512xf32, #tpu.memory_space<vmem>>, %arg3: memref<1x32x512xf32, #tpu.memory_space<vmem>>, %arg4: memref<32x32xf32, #tpu.memory_space<vmem>>, %arg5: memref<32x1xf32, #tpu.memory_space<vmem>>, %arg6: memref<32x32xf32, #tpu.memory_space<vmem>>, %arg7: memref<32x1xf32, #tpu.memory_space<vmem>>, %arg8: memref<40x32xf32, #tpu.memory_space<vmem>>, %arg9: memref<40x1xf32, #tpu.memory_space<vmem>>, %arg10: memref<1x3x512xf32, #tpu.memory_space<vmem>>, %arg11: memref<1x32x512xf32, #tpu.memory_space<vmem>>) attributes {dimension_semantics = [#tpu.dimension_semantics<parallel>, #tpu.dimension_semantics<parallel>], iteration_bounds = array<i64: 2, 1>, scalar_prefetch = 0 : i64, scratch_operands = 0 : i64, tpu.core_type = #tpu.core_type<tc>, window_params = [{transform_indices = @transform_0, window_bounds = array<i64: 1, 3, 512>}, {transform_indices = @transform_1, window_bounds = array<i64: 1, 32, 512>}, {pipeline_mode = #tpu.pipeline_mode<synchronous>, transform_indices = @transform_2, window_bounds = array<i64: 32, 32>}, {pipeline_mode = #tpu.pipeline_mode<synchronous>, transform_indices = @transform_3, window_bounds = array<i64: 32, 1>}, {pipeline_mode = #tpu.pipeline_mode<synchronous>, transform_indices = @transform_4, window_bounds = array<i64: 32, 32>}, {pipeline_mode = #tpu.pipeline_mode<synchronous>, transform_indices = @transform_5, window_bounds = array<i64: 32, 1>}, {pipeline_mode = #tpu.pipeline_mode<synchronous>, transform_indices = @transform_6, window_bounds = array<i64: 40, 32>}, {pipeline_mode = #tpu.pipeline_mode<synchronous>, transform_indices = @transform_7, window_bounds = array<i64: 40, 1>}, {transform_indices = @transform_8, window_bounds = array<i64: 1, 3, 512>}, {transform_indices = @transform_9, window_bounds = array<i64: 1, 32, 512>}]} {
    %c0 = arith.constant 0 : index
    %c0_0 = arith.constant 0 : index
    %c0_1 = arith.constant 0 : index
    %0 = vector.load %arg3[%c0, %c0_0, %c0_1] : memref<1x32x512xf32, #tpu.memory_space<vmem>>, vector<1x32x512xf32>
    %1 = vector.shape_cast %0 : vector<1x32x512xf32> to vector<32x512xf32>
    %c0_2 = arith.constant 0 : index
    %c0_3 = arith.constant 0 : index
    %c0_4 = arith.constant 0 : index
    %2 = vector.load %arg2[%c0_2, %c0_3, %c0_4] : memref<1x3x512xf32, #tpu.memory_space<vmem>>, vector<1x3x512xf32>
    %3 = vector.shape_cast %2 : vector<1x3x512xf32> to vector<3x512xf32>
    %c0_5 = arith.constant 0 : index
    %c0_6 = arith.constant 0 : index
    %4 = vector.load %arg4[%c0_5, %c0_6] : memref<32x32xf32, #tpu.memory_space<vmem>>, vector<32x32xf32>
    %cst = arith.constant dense<0.000000e+00> : vector<32x512xf32>
    %5 = tpu.matmul %4, %1, %cst {dimension_numbers = #tpu.dot_dimension_numbers<[1], [0], [0], [1], [0, 0, 1, 1], [], []>} : vector<32x32xf32>, vector<32x512xf32>, vector<32x512xf32> -> vector<32x512xf32>
    %c0_7 = arith.constant 0 : index
    %c0_8 = arith.constant 0 : index
    %6 = vector.load %arg5[%c0_7, %c0_8] : memref<32x1xf32, #tpu.memory_space<vmem>>, vector<32x1xf32>
    %7 = vector.broadcast %6 : vector<32x1xf32> to vector<32x512xf32>
    %8 = arith.addf %5, %7 : vector<32x512xf32>
    %cst_9 = arith.constant 0.000000e+00 : f32
    %9 = vector.broadcast %cst_9 : f32 to vector<32x512xf32>
    %10 = arith.maximumf %8, %9 : vector<32x512xf32>
    %c0_10 = arith.constant 0 : index
    %c0_11 = arith.constant 0 : index
    %11 = vector.load %arg6[%c0_10, %c0_11] : memref<32x32xf32, #tpu.memory_space<vmem>>, vector<32x32xf32>
    %cst_12 = arith.constant dense<0.000000e+00> : vector<32x512xf32>
    %12 = tpu.matmul %11, %10, %cst_12 {dimension_numbers = #tpu.dot_dimension_numbers<[1], [0], [0], [1], [0, 0, 1, 1], [], []>} : vector<32x32xf32>, vector<32x512xf32>, vector<32x512xf32> -> vector<32x512xf32>
    %c0_13 = arith.constant 0 : index
    %c0_14 = arith.constant 0 : index
    %13 = vector.load %arg7[%c0_13, %c0_14] : memref<32x1xf32, #tpu.memory_space<vmem>>, vector<32x1xf32>
    %14 = vector.broadcast %13 : vector<32x1xf32> to vector<32x512xf32>
    %15 = arith.addf %12, %14 : vector<32x512xf32>
    %cst_15 = arith.constant 0.000000e+00 : f32
    %16 = vector.broadcast %cst_15 : f32 to vector<32x512xf32>
    %17 = arith.maximumf %15, %16 : vector<32x512xf32>
    %c0_16 = arith.constant 0 : index
    %c0_17 = arith.constant 0 : index
    %18 = vector.load %arg8[%c0_16, %c0_17] : memref<40x32xf32, #tpu.memory_space<vmem>>, vector<40x32xf32>
    %cst_18 = arith.constant dense<0.000000e+00> : vector<40x512xf32>
    %19 = tpu.matmul %18, %17, %cst_18 {dimension_numbers = #tpu.dot_dimension_numbers<[1], [0], [0], [1], [0, 0, 1, 1], [], []>} : vector<40x32xf32>, vector<32x512xf32>, vector<40x512xf32> -> vector<40x512xf32>
    %c0_19 = arith.constant 0 : index
    %c0_20 = arith.constant 0 : index
    %20 = vector.load %arg9[%c0_19, %c0_20] : memref<40x1xf32, #tpu.memory_space<vmem>>, vector<40x1xf32>
    %21 = vector.broadcast %20 : vector<40x1xf32> to vector<40x512xf32>
    %22 = arith.addf %19, %21 : vector<40x512xf32>
    %23 = vector.extract_strided_slice %22 {offsets = [0, 0], sizes = [3, 512], strides = [1, 1]} : vector<40x512xf32> to vector<3x512xf32>
    %24 = arith.addf %3, %23 : vector<3x512xf32>
    %c0_21 = arith.constant 0 : index
    %c0_22 = arith.constant 0 : index
    %c0_23 = arith.constant 0 : index
    %25 = vector.load %arg10[%c0_21, %c0_22, %c0_23] : memref<1x3x512xf32, #tpu.memory_space<vmem>>, vector<1x3x512xf32>
    %26 = vector.shape_cast %25 : vector<1x3x512xf32> to vector<3x512xf32>
    %27 = vector.shape_cast %24 : vector<3x512xf32> to vector<1x3x512xf32>
    tpu.vector_store %arg10[%c0_21, %c0_22, %c0_23], %27 {strides = array<i32>} : memref<1x3x512xf32, #tpu.memory_space<vmem>>, vector<1x3x512xf32>,
    %28 = vector.extract_strided_slice %22 {offsets = [8, 0], sizes = [32, 512], strides = [1, 1]} : vector<40x512xf32> to vector<32x512xf32>
    %29 = arith.addf %1, %28 : vector<32x512xf32>
    %c0_24 = arith.constant 0 : index
    %c0_25 = arith.constant 0 : index
    %c0_26 = arith.constant 0 : index
    %30 = vector.load %arg11[%c0_24, %c0_25, %c0_26] : memref<1x32x512xf32, #tpu.memory_space<vmem>>, vector<1x32x512xf32>
    %31 = vector.shape_cast %30 : vector<1x32x512xf32> to vector<32x512xf32>
    %32 = vector.shape_cast %29 : vector<32x512xf32> to vector<1x32x512xf32>
    tpu.vector_store %arg11[%c0_24, %c0_25, %c0_26], %32 {strides = array<i32>} : memref<1x32x512xf32, #tpu.memory_space<vmem>>, vector<1x32x512xf32>,
    return
  }
  func.func @transform_0(%arg0: i32, %arg1: i32) -> (i32, i32, i32) {
    %c0_i32 = arith.constant 0 : i32
    %c0_i32_0 = arith.constant 0 : i32
    return %arg0, %c0_i32, %arg1 : i32, i32, i32
  }
  func.func @transform_1(%arg0: i32, %arg1: i32) -> (i32, i32, i32) {
    %c0_i32 = arith.constant 0 : i32
    %c0_i32_0 = arith.constant 0 : i32
    return %arg0, %c0_i32, %arg1 : i32, i32, i32
  }
  func.func @transform_2(%arg0: i32, %arg1: i32) -> (i32, i32) {
    %c0_i32 = arith.constant 0 : i32
    %c0_i32_0 = arith.constant 0 : i32
    %c0_i32_1 = arith.constant 0 : i32
    return %c0_i32, %c0_i32_0 : i32, i32
  }
  func.func @transform_3(%arg0: i32, %arg1: i32) -> (i32, i32) {
    %c0_i32 = arith.constant 0 : i32
    %c0_i32_0 = arith.constant 0 : i32
    %c0_i32_1 = arith.constant 0 : i32
    return %c0_i32, %c0_i32_0 : i32, i32
  }
  func.func @transform_4(%arg0: i32, %arg1: i32) -> (i32, i32) {
    %c0_i32 = arith.constant 0 : i32
    %c0_i32_0 = arith.constant 0 : i32
    %c0_i32_1 = arith.constant 0 : i32
    return %c0_i32, %c0_i32_0 : i32, i32
  }
  func.func @transform_5(%arg0: i32, %arg1: i32) -> (i32, i32) {
    %c0_i32 = arith.constant 0 : i32
    %c0_i32_0 = arith.constant 0 : i32
    %c0_i32_1 = arith.constant 0 : i32
    return %c0_i32, %c0_i32_0 : i32, i32
  }
  func.func @transform_6(%arg0: i32, %arg1: i32) -> (i32, i32) {
    %c0_i32 = arith.constant 0 : i32
    %c0_i32_0 = arith.constant 0 : i32
    %c0_i32_1 = arith.constant 0 : i32
    return %c0_i32, %c0_i32_0 : i32, i32
  }
  func.func @transform_7(%arg0: i32, %arg1: i32) -> (i32, i32) {
    %c0_i32 = arith.constant 0 : i32
    %c0_i32_0 = arith.constant 0 : i32
    %c0_i32_1 = arith.constant 0 : i32
    return %c0_i32, %c0_i32_0 : i32, i32
  }
  func.func @transform_8(%arg0: i32, %arg1: i32) -> (i32, i32, i32) {
    %c0_i32 = arith.constant 0 : i32
    %c0_i32_0 = arith.constant 0 : i32
    return %arg0, %c0_i32, %arg1 : i32, i32, i32
  }
  func.func @transform_9(%arg0: i32, %arg1: i32) -> (i32, i32, i32) {
    %c0_i32 = arith.constant 0 : i32
    %c0_i32_0 = arith.constant 0 : i32
    return %arg0, %c0_i32, %arg1 : i32, i32, i32
  }
}

module attributes {stable_mosaic.version = 11 : i64} {
  func.func @kernel(%arg0: i32, %arg1: i32, %arg2: memref<1x3x512xf32, #tpu.memory_space<vmem>>, %arg3: memref<1x32x512xf32, #tpu.memory_space<vmem>>, %arg4: memref<32x32xf32, #tpu.memory_space<vmem>>, %arg5: memref<32x1xf32, #tpu.memory_space<vmem>>, %arg6: memref<32x32xf32, #tpu.memory_space<vmem>>, %arg7: memref<32x1xf32, #tpu.memory_space<vmem>>, %arg8: memref<40x32xf32, #tpu.memory_space<vmem>>, %arg9: memref<40x1xf32, #tpu.memory_space<vmem>>, %arg10: memref<1x3x512xf32, #tpu.memory_space<vmem>>, %arg11: memref<1x32x512xf32, #tpu.memory_space<vmem>>) attributes {dimension_semantics = [#tpu.dimension_semantics<parallel>, #tpu.dimension_semantics<parallel>], iteration_bounds = array<i64: 2, 1>, scalar_prefetch = 0 : i64, scratch_operands = 0 : i64, tpu.core_type = #tpu.core_type<tc>, window_params = [{transform_indices = @transform_0, window_bounds = array<i64: 1, 3, 512>}, {transform_indices = @transform_1, window_bounds = array<i64: 1, 32, 512>}, {pipeline_mode = #tpu.pipeline_mode<synchronous>, transform_indices = @transform_2, window_bounds = array<i64: 32, 32>}, {pipeline_mode = #tpu.pipeline_mode<synchronous>, transform_indices = @transform_3, window_bounds = array<i64: 32, 1>}, {pipeline_mode = #tpu.pipeline_mode<synchronous>, transform_indices = @transform_4, window_bounds = array<i64: 32, 32>}, {pipeline_mode = #tpu.pipeline_mode<synchronous>, transform_indices = @transform_5, window_bounds = array<i64: 32, 1>}, {pipeline_mode = #tpu.pipeline_mode<synchronous>, transform_indices = @transform_6, window_bounds = array<i64: 40, 32>}, {pipeline_mode = #tpu.pipeline_mode<synchronous>, transform_indices = @transform_7, window_bounds = array<i64: 40, 1>}, {transform_indices = @transform_8, window_bounds = array<i64: 1, 3, 512>}, {transform_indices = @transform_9, window_bounds = array<i64: 1, 32, 512>}]} {
    %c0 = arith.constant 0 : index
    %c0_0 = arith.constant 0 : index
    %c0_1 = arith.constant 0 : index
    %0 = vector.load %arg3[%c0, %c0_0, %c0_1] : memref<1x32x512xf32, #tpu.memory_space<vmem>>, vector<1x32x512xf32>
    %1 = vector.shape_cast %0 : vector<1x32x512xf32> to vector<32x512xf32>
    %c0_2 = arith.constant 0 : index
    %c0_3 = arith.constant 0 : index
    %c0_4 = arith.constant 0 : index
    %2 = vector.load %arg2[%c0_2, %c0_3, %c0_4] : memref<1x3x512xf32, #tpu.memory_space<vmem>>, vector<1x3x512xf32>
    %3 = vector.shape_cast %2 : vector<1x3x512xf32> to vector<3x512xf32>
    %c0_5 = arith.constant 0 : index
    %c0_6 = arith.constant 0 : index
    %4 = vector.load %arg4[%c0_5, %c0_6] : memref<32x32xf32, #tpu.memory_space<vmem>>, vector<32x32xf32>
    %cst = arith.constant dense<0.000000e+00> : vector<32x512xf32>
    %5 = tpu.matmul %4, %1, %cst {dimension_numbers = #tpu.dot_dimension_numbers<[1], [0], [0], [1], [0, 0, 1, 1], [], []>} : vector<32x32xf32>, vector<32x512xf32>, vector<32x512xf32> -> vector<32x512xf32>
    %c0_7 = arith.constant 0 : index
    %c0_8 = arith.constant 0 : index
    %6 = vector.load %arg5[%c0_7, %c0_8] : memref<32x1xf32, #tpu.memory_space<vmem>>, vector<32x1xf32>
    %7 = vector.broadcast %6 : vector<32x1xf32> to vector<32x512xf32>
    %8 = arith.addf %5, %7 : vector<32x512xf32>
    %cst_9 = arith.constant 0.000000e+00 : f32
    %9 = vector.broadcast %cst_9 : f32 to vector<32x512xf32>
    %10 = arith.maximumf %8, %9 : vector<32x512xf32>
    %c0_10 = arith.constant 0 : index
    %c0_11 = arith.constant 0 : index
    %11 = vector.load %arg6[%c0_10, %c0_11] : memref<32x32xf32, #tpu.memory_space<vmem>>, vector<32x32xf32>
    %cst_12 = arith.constant dense<0.000000e+00> : vector<32x512xf32>
    %12 = tpu.matmul %11, %10, %cst_12 {dimension_numbers = #tpu.dot_dimension_numbers<[1], [0], [0], [1], [0, 0, 1, 1], [], []>} : vector<32x32xf32>, vector<32x512xf32>, vector<32x512xf32> -> vector<32x512xf32>
    %c0_13 = arith.constant 0 : index
    %c0_14 = arith.constant 0 : index
    %13 = vector.load %arg7[%c0_13, %c0_14] : memref<32x1xf32, #tpu.memory_space<vmem>>, vector<32x1xf32>
    %14 = vector.broadcast %13 : vector<32x1xf32> to vector<32x512xf32>
    %15 = arith.addf %12, %14 : vector<32x512xf32>
    %cst_15 = arith.constant 0.000000e+00 : f32
    %16 = vector.broadcast %cst_15 : f32 to vector<32x512xf32>
    %17 = arith.maximumf %15, %16 : vector<32x512xf32>
    %c0_16 = arith.constant 0 : index
    %c0_17 = arith.constant 0 : index
    %18 = vector.load %arg8[%c0_16, %c0_17] : memref<40x32xf32, #tpu.memory_space<vmem>>, vector<40x32xf32>
    %cst_18 = arith.constant dense<0.000000e+00> : vector<40x512xf32>
    %19 = tpu.matmul %18, %17, %cst_18 {dimension_numbers = #tpu.dot_dimension_numbers<[1], [0], [0], [1], [0, 0, 1, 1], [], []>} : vector<40x32xf32>, vector<32x512xf32>, vector<40x512xf32> -> vector<40x512xf32>
    %c0_19 = arith.constant 0 : index
    %c0_20 = arith.constant 0 : index
    %20 = vector.load %arg9[%c0_19, %c0_20] : memref<40x1xf32, #tpu.memory_space<vmem>>, vector<40x1xf32>
    %21 = vector.broadcast %20 : vector<40x1xf32> to vector<40x512xf32>
    %22 = arith.addf %19, %21 : vector<40x512xf32>
    %23 = vector.extract_strided_slice %22 {offsets = [0, 0], sizes = [3, 512], strides = [1, 1]} : vector<40x512xf32> to vector<3x512xf32>
    %24 = arith.addf %3, %23 : vector<3x512xf32>
    %c0_21 = arith.constant 0 : index
    %c0_22 = arith.constant 0 : index
    %c0_23 = arith.constant 0 : index
    %25 = vector.load %arg10[%c0_21, %c0_22, %c0_23] : memref<1x3x512xf32, #tpu.memory_space<vmem>>, vector<1x3x512xf32>
    %26 = vector.shape_cast %25 : vector<1x3x512xf32> to vector<3x512xf32>
    %27 = vector.shape_cast %24 : vector<3x512xf32> to vector<1x3x512xf32>
    tpu.vector_store %arg10[%c0_21, %c0_22, %c0_23], %27 {strides = array<i32>} : memref<1x3x512xf32, #tpu.memory_space<vmem>>, vector<1x3x512xf32>,
    %28 = vector.extract_strided_slice %22 {offsets = [8, 0], sizes = [32, 512], strides = [1, 1]} : vector<40x512xf32> to vector<32x512xf32>
    %29 = arith.addf %1, %28 : vector<32x512xf32>
    %c0_24 = arith.constant 0 : index
    %c0_25 = arith.constant 0 : index
    %c0_26 = arith.constant 0 : index
    %30 = vector.load %arg11[%c0_24, %c0_25, %c0_26] : memref<1x32x512xf32, #tpu.memory_space<vmem>>, vector<1x32x512xf32>
    %31 = vector.shape_cast %30 : vector<1x32x512xf32> to vector<32x512xf32>
    %32 = vector.shape_cast %29 : vector<32x512xf32> to vector<1x32x512xf32>
    tpu.vector_store %arg11[%c0_24, %c0_25, %c0_26], %32 {strides = array<i32>} : memref<1x32x512xf32, #tpu.memory_space<vmem>>, vector<1x32x512xf32>,
    return
  }
  func.func @transform_0(%arg0: i32, %arg1: i32) -> (i32, i32, i32) {
    %c0_i32 = arith.constant 0 : i32
    %c0_i32_0 = arith.constant 0 : i32
    return %arg0, %c0_i32, %arg1 : i32, i32, i32
  }
  func.func @transform_1(%arg0: i32, %arg1: i32) -> (i32, i32, i32) {
    %c0_i32 = arith.constant 0 : i32
    %c0_i32_0 = arith.constant 0 : i32
    return %arg0, %c0_i32, %arg1 : i32, i32, i32
  }
  func.func @transform_2(%arg0: i32, %arg1: i32) -> (i32, i32) {
    %c0_i32 = arith.constant 0 : i32
    %c0_i32_0 = arith.constant 0 : i32
    %c0_i32_1 = arith.constant 0 : i32
    return %c0_i32, %c0_i32_0 : i32, i32
  }
  func.func @transform_3(%arg0: i32, %arg1: i32) -> (i32, i32) {
    %c0_i32 = arith.constant 0 : i32
    %c0_i32_0 = arith.constant 0 : i32
    %c0_i32_1 = arith.constant 0 : i32
    return %c0_i32, %c0_i32_0 : i32, i32
  }
  func.func @transform_4(%arg0: i32, %arg1: i32) -> (i32, i32) {
    %c0_i32 = arith.constant 0 : i32
    %c0_i32_0 = arith.constant 0 : i32
    %c0_i32_1 = arith.constant 0 : i32
    return %c0_i32, %c0_i32_0 : i32, i32
  }
  func.func @transform_5(%arg0: i32, %arg1: i32) -> (i32, i32) {
    %c0_i32 = arith.constant 0 : i32
    %c0_i32_0 = arith.constant 0 : i32
    %c0_i32_1 = arith.constant 0 : i32
    return %c0_i32, %c0_i32_0 : i32, i32
  }
  func.func @transform_6(%arg0: i32, %arg1: i32) -> (i32, i32) {
    %c0_i32 = arith.constant 0 : i32
    %c0_i32_0 = arith.constant 0 : i32
    %c0_i32_1 = arith.constant 0 : i32
    return %c0_i32, %c0_i32_0 : i32, i32
  }
  func.func @transform_7(%arg0: i32, %arg1: i32) -> (i32, i32) {
    %c0_i32 = arith.constant 0 : i32
    %c0_i32_0 = arith.constant 0 : i32
    %c0_i32_1 = arith.constant 0 : i32
    return %c0_i32, %c0_i32_0 : i32, i32
  }
  func.func @transform_8(%arg0: i32, %arg1: i32) -> (i32, i32, i32) {
    %c0_i32 = arith.constant 0 : i32
    %c0_i32_0 = arith.constant 0 : i32
    return %arg0, %c0_i32, %arg1 : i32, i32, i32
  }
  func.func @transform_9(%arg0: i32, %arg1: i32) -> (i32, i32, i32) {
    %c0_i32 = arith.constant 0 : i32
    %c0_i32_0 = arith.constant 0 : i32
    return %arg0, %c0_i32, %arg1 : i32, i32, i32
  }
}

</mosaic_0001>

<bundles_post_ra>
// kernel: tpu_custom_call.1
= control target key start
LH: loop header
LB: loop body
LE: loop exit
PB: predicated region body
PF: predicated region fallthrough
CT: control target
= control target key end

     0   :  { %15 = vsyncpa [#allocation3], 0  ;;  %s2130_s0 = inlined_call_operand.vmem [shape: f32[2,3,512], index: 0, kind: input, shape index: {}]   ;;  %s2131_s1 = inlined_call_operand.hbm [shape: f32[2,32,512], index: 1, kind: input, shape index: {}]   ;;  %s2132_s2 = inlined_call_operand.vmem [shape: f32[32,32], index: 2, kind: input, shape index: {}]   ;;  %s2133_s3 = inlined_call_operand.vmem [shape: f32[32,1], index: 3, kind: input, shape index: {}]   ;;  %s2134_s4 = inlined_call_operand.vmem [shape: f32[32,32], index: 4, kind: input, shape index: {}]   ;;  %s2135_s5 = inlined_call_operand.vmem [shape: f32[32,1], index: 5, kind: input, shape index: {}]   ;;  %s2136_s6 = inlined_call_operand.vmem [shape: f32[40,32], index: 6, kind: input, shape index: {}]   ;;  %s2137_s7 = inlined_call_operand.vmem [shape: f32[40,1], index: 7, kind: input, shape index: {}]   ;;  %s2138_s8 = inlined_call_operand.vmem [shape: f32[2,3,512], index: 8, kind: output, shape index: {0}]   ;;  %s2139_s9 = inlined_call_operand.hbm [shape: f32[2,32,512], index: 9, kind: output, shape index: {1}]  }
   0x1   :  { %17 = vsyncpa [#allocation3 + $0x1], 0 }
   0x2   :  { %18 = vsyncpa [#allocation4], 0 }
   0x3   :  { %20 = vsyncpa [#allocation4 + $0x1], 0  ;;  %s1712_s30 = smov 0   ;;  %s1714_s10 = smov 0  }
   0x4   :  { %s1716_s11 = smov 0   ;;  %s1718_s12 = smov 0  }
   0x5   :  { %s1720_s13 = smov 0   ;;  %s1722_s14 = smov 0  }
   0x6 LB: > { %s1373_s15 = sadd.s32 4294967295, %s1652_s14   ;;  %s1374_s16 = sadd.s32 4294967294, %s1652_s14   ;;  %s1652_s14 = sphi %s1722_s14, %s26_s14   ;;  %s1648_s13 = sphi %s1720_s13, %s2157_s13   ;;  %s1644_s12 = sphi %s1718_s12, %s2156_s12   ;;  %s1640_s11 = sphi %s1716_s11, %s2155_s11   ;;  %s1636_s10 = sphi %s1714_s10, %s2154_s10   ;;  %s1632_s30 = sphi %s1712_s30, %s2153_s30  }
   0x7   : > { %s38_s17 = sadd.s32 1, %s1648_s13  ;;  %s75_s18 = sadd.s32 1, %s1640_s11 }
   0x8   : > { %p40_p0 = scmp.ge.s32.totalorder %s38_s17, 2  ;;  %p82_p1 = scmp.ne.s32.totalorder %s1640_s11, %s1636_s10 }
   0x9   : > { %p83_p2 = scmp.eq.s32.totalorder %s1652_s14, 0  ;;  %p88_p3 = scmp.ne.s32.totalorder %s1636_s10, %s1632_s30 }
   0xa   : > { %s2159_s17 = smov (%p40_p0, %s38_s17), 0  ;;  %p89_p5 = scmp.eq.s32.totalorder %s1373_s15, 0 }
   0xb   : > { %2142 = sst [smem:[#allocation8_spill]] %s2159_s17  ;;  %p1753_p4 = por %p83_p2, %p82_p1 }
   0xc   : > { %s70_s20 = ssub.s32 %s1648_s13, %s2159_s17  ;;  %p268_p6 = scmp.eq.s32.totalorder %s1373_s15, 1 }
   0xd   : > { %p73_p7 = scmp.eq.s32.totalorder %s70_s20, 0  ;;  %p1759_p8 = por %p89_p5, %p88_p3 }
   0xe   : > { %p1763_p9 = por %p268_p6, %p82_p1  ;;  %p274_p10 = scmp.eq.s32.totalorder %s1374_s16, 1 }
   0xf   : > { %s1768_s23 = scalar_select %p73_p7, %s1640_s11, %s75_s18  }
  0x10   : > { %s2145_s22 = scalar_select %p1763_p9, 1, 0 }
  0x11   : > { %p1770_p11 = por %p274_p10, %p88_p3  ;;  %p1482_p13 = scmp.lt.s32.totalorder %s1652_s14, 2 }
  0x12   : > { %s325_s25 = sand.u32 1, %s1640_s11   ;;  %s1418_s27 = sshll.u32 %s1648_s13, 11 }
  0x13   : > { %s2146_s24 = scalar_select %p1770_p11, 1, 0 }
  0x14   : > { %s1377_s26 = sshll.u32 %s325_s25, 7  ;;  %s1781_s15 = scalar_lea.hbm %s2131_s1, %s1418_s27 }
  0x15   : > { %s329_s16 = scalar_lea.vmem [#allocation2], %s1377_s26  ;;  %p1787_p0 = pnand %p1482_p13, %p1753_p4 }
  0x16   : > { %s338_s18 = sshll.u32 %s329_s16, 4  ;;  %s1792_s17 = scalar_lea.sflag [#allocation3], %s325_s25  ;;  %s1783_s18 = int_to_ptr.vmem [resolvable:$true] %s338_s18 }
  0x17   : > { %s1540_s27 = scalar_lea.hbm %s1781_s15, 2048  ;;  %p1542_p3 = pneg %p1787_p0 }
  0x18   : > { %p1541_p2 = scmp.ne.s32.totalorder %s1781_s15, %s1540_s27  ;;  %s1545_s19 = scalar_lea.hbm %s2131_s1, 4096 }
  0x19   : > { %p1546_p4 = scmp.lt.u32.totalorder %s1781_s15, %s2131_s1  ;;  %p1547_p7 = scmp.lt.u32.totalorder %s1545_s19, %s1540_s27 }
  0x1a   : > { %p1543_p5 = pnand %p1542_p3, %p1541_p2  ;;  %p1549_p13 = scmp.lt.u32.totalorder %s1540_s27, %s1781_s15 }
  0x1b   : > { %p1548_p10 = por %p1547_p7, %p1546_p4 }
  0x1c   : > { %p1544_p6 = pneg %p1543_p5 }
  0x1d   : > { %p1550_p12 = por %p1549_p13, %p1548_p10 }
  0x1f   : > { %p1551_p1 = pnand %p1550_p12, %p1544_p6 }
  0x21   : > { %1554 = shalt.err (!%p1551_p1)
}
  0x22   : > { %s1555_s25 = scalar_lea.vmem %s1783_s18, 2048  ;;  %s1654_s26 = smov [#allocation2]  }
  0x23   : > { %p1556_p2 = scmp.ne.s32.totalorder %s1783_s18, %s1555_s25  ;;  %s1560_s28 = sshll.u32 %s1654_s26, 4  ;;  %s1561_s28 = int_to_ptr.vmem [resolvable:$false] %s1560_s28 }
  0x24   : > { %s1562_s29 = scalar_lea.vmem %s1561_s28, 4096  ;;  %p1563_p9 = scmp.lt.s32.totalorder %s1783_s18, %s1561_s28 }
  0x25   : > { %p1558_p5 = pnand %p1556_p2, %p1542_p3  ;;  %p1564_p4 = scmp.lt.s32.totalorder %s1562_s29, %s1555_s25 }
  0x27   : > { %p1559_p11 = pneg %p1558_p5  ;;  %p1565_p7 = por %p1564_p4, %p1563_p9 }
  0x29   : > { %p1566_p10 = pnand %p1565_p7, %p1559_p11 }
  0x2b   : > { %1569 = shalt.err (!%p1566_p10)
}
  0x2c   : > { %s1655_s27 = smov 512   ;;  %s1656_s19 = smov 32  }
  0x2d   : > { %1477 = dma.hbm_to_vmem [thread:$0]  (!%p1787_p0), %s1781_s15, 2048, %s1783_s18, %s1792_s17, %s1655_s27, %s1655_s27, %s1656_s19  }
  0x2e   : > { %p346_p12 = scmp.lt.s32.totalorder %s1652_s14, 3  ;;  %p2148_p1 = scmp.ge.s32.totalorder %s1652_s14, 1 }
  0x30   : > { %p347_p3 = pnand %p2148_p1, %p346_p12 }
  0x31   : > { %s1824_s16 = sand.u32 (!%p347_p3), 1, %s1636_s10  }
  0x32   : > { %350 = sbr.rel (%p347_p3) target bundleno = 789 (0x315), region = 52  ;;  %s1381_s25 = sshll.u32 (!%p347_p3), %s1824_s16, 7 }
  0x33   : > { %s353_s26 = scalar_lea.sflag (!%p347_p3), [#allocation3], %s1824_s16  ;;  %s1830_s28 = scalar_lea.vmem (!%p347_p3), [#allocation2], %s1381_s25 }
  0x39   : > { %1623 = dma.done.wait (%p1759_p8), %s353_s26, 2048  }
  0x3a   : > { %1625 = vsyncadd (%p1759_p8), %s353_s26, 4294965248  ;;  %v1657_v0 = vmov 0.0   ;;  %v1658_v1 = vmov 0   ;;  %v1839_v2 = vld [vmem:[%s1830_s28 + $0x8] sm:$0xff]  ;;  %v1845_v4 = vld [vmem:[%s1830_s28 + $0x18] sm:$0xff]  ;;  %vm477_vm0 = vcmask 261120  }
  0x3b   : > { %554 = vmatprep.mubr.f32.mxu0 %v1657_v0  ;;  %643 = vmatprep.mubr.f32.mxu1 %v1657_v0  ;;  %v1842_v3 = vld [vmem:[%s1830_s28 + $0x28] sm:$0xff]  ;;  %v1850_v6 = vld [vmem:[%s1830_s28 + $0x38] sm:$0xff]  ;;  %v1853_v7 = vld [vmem:[%s1830_s28] sm:$0xff]  ;;  %p410_p8 = scmp.lt.s32.totalorder %s1644_s12, 1  ;;  %s2043_s17 = scalar_lea.vmem [#allocation5], %s1381_s25 }
  0x3c   : > { %1538 = vset.pattern.permute.xlu0 %v1658_v1  ;;  %1539 = vset.pattern.permute.xlu1 %v1658_v1  ;;  %v1422_v5 = vpack.c.bf16 %v1842_v3, %v1839_v2  ;;  %v1856_v8 = vld [vmem:[%s1830_s28 + $0x20] sm:$0xff]  ;;  %v1430_v9 = vpack.c.bf16 %v1850_v6, %v1845_v4  ;;  %v1863_v11 = vld [vmem:[%s1830_s28 + $0x10] sm:$0xff]  ;;  %v1869_v13 = vld [vmem:[%s1830_s28 + $0x48] sm:$0xff]  ;;  %s1421_s25 = sshll.u32 %s1644_s12, 11  ;;  %s1231_s21 = sshll.u32 %s2043_s17, 4  ;;  %s2076_s21 = int_to_ptr.vmem [resolvable:$true] %s1231_s21 }
  0x3d   : > { %v1424_v10 = vpack.c.bf16 %v1856_v8, %v1853_v7  ;;  %v1866_v12 = vld [vmem:[%s1830_s28 + $0x30] sm:$0xff]  ;;  %v1874_v15 = vld [vmem:[%s1830_s28 + $0x68] sm:$0xff]  ;;  %v1877_v16 = vld [vmem:[%s1830_s28 + $0x58] sm:$0xff]  ;;  %s411_s15 = scalar_select %p410_p8, %s1644_s12, 1 }
  0x3e   : > { %1423 = vmatprep.subr.bf16.mxu0 %v1422_v5  ;;  %v1432_v14 = vpack.c.bf16 %v1866_v12, %v1863_v11  ;;  %v1880_v17 = vld [vmem:[%s1830_s28 + $0x78] sm:$0xff]  ;;  %1431 = vmatprep.subr.bf16.mxu1 %v1430_v9  ;;  %v1426_v18 = vpack.c.bf16 %v1874_v15, %v1869_v13  ;;  %v1887_v20 = vld [vmem:[%s1830_s28 + $0x40] sm:$0xff]  ;;  %v1893_v22 = vld [vmem:[%s1830_s28 + $0x50] sm:$0xff]  ;;  %s1212_s20 = scalar_lea.sflag [#allocation4], %s1824_s16  ;;  %s1570_s29 = scalar_lea.vmem %s2076_s21, 2048 }
  0x3f   : > { %1425 = vmatpush1.bf16.msra.mxu0 %v1424_v10  ;;  %v1434_v19 = vpack.c.bf16 %v1880_v17, %v1877_v16  ;;  %v1890_v21 = vld [vmem:[%s1830_s28 + $0x60] sm:$0xff]  ;;  %v1898_v24 = vld [vmem:[%s1830_s28 + $0x70] sm:$0xff]  ;;  %v454_v29 = vld [vmem:[%s2133_s3 + $0x8] sm:$0xff]  ;;  %s1419_s18 = sshll.u32 %s411_s15, 4  ;;  %p1571_p9 = scmp.ne.s32.totalorder %s2076_s21, %s1570_s29 }
  0x40   : > { %1433 = vmatpush1.bf16.msra.mxu1 %v1432_v14  ;;  %v1428_v23 = vpack.c.bf16 %v1890_v21, %v1887_v20  ;;  %1427 = vmatprep.subr.bf16.mxu0 %v1426_v18  ;;  %v1436_v25 = vpack.c.bf16 %v1898_v24, %v1893_v22  ;;  %v453_v26 = vld [vmem:[%s2133_s3] sm:$0xff]  ;;  %v455_v27 = vld [vmem:[%s2133_s3 + $0x10] sm:$0xff]  ;;  %v456_v30 = vld [vmem:[%s2133_s3 + $0x18] sm:$0xff]  ;;  %s417_s27 = scalar_lea.vmem %s2130_s0, %s1419_s18  ;;  %s428_s28 = scalar_lea.vmem %s2138_s8, %s1419_s18 }
  0x41   : > { %1435 = vmatprep.subr.bf16.mxu1 %v1434_v19  ;;  %459 = vperm.xlu0 %1538, %v453_v26   ;;  %v449_v28 = vld [vmem:[%s2132_s2] sm:$0xff]  ;;  %v450_v31 = vld [vmem:[%s2132_s2 + $0x8] sm:$0xff]  ;;  %v451_v34 = vld [vmem:[%s2132_s2 + $0x10] sm:$0xff]  ;;  %s2074_s18 = scalar_lea.hbm %s2139_s9, %s1421_s25  ;;  %p2149_p11 = scmp.ne.s32.totalorder %s2145_s22, 0 }
  0x42   : > { %469 = vperm.xlu1 %1539, %v455_v27   ;;  %v688_v32 = vld [vmem:[%s2135_s5] sm:$0xff]  ;;  %v689_v33 = vld [vmem:[%s2135_s5 + $0x8] sm:$0xff]  ;;  %v690_v35 = vld [vmem:[%s2135_s5 + $0x10] sm:$0xff] }
  0x43   : > { %1429 = vmatpush1.bf16.msra.mxu0 %v1428_v23  ;;  %v691_v36 = vld [vmem:[%s2135_s5 + $0x18] sm:$0xff]  ;;  %v923_v38 = vld [vmem:[%s2137_s7] sm:$0xff]  ;;  %v924_v39 = vld [vmem:[%s2137_s7 + $0x8] sm:$0xff]  ;;  %p1572_p0 = pnand %p1571_p9, %p2149_p11 }
  0x44   : > { %1437 = vmatpush1.bf16.msra.mxu1 %v1436_v25  ;;  %v452_v37 = vld [vmem:[%s2132_s2 + $0x18] sm:$0xff]  ;;  %v925_v40 = vld [vmem:[%s2137_s7 + $0x10] sm:$0xff]  ;;  %v927_v42 = vld [vmem:[%s2137_s7 + $0x20] sm:$0xff] }
  0x45   : > { %464 = vperm.xlu0 %1538, %v454_v29   ;;  %v926_v41 = vld [vmem:[%s2137_s7 + $0x18] sm:$0xff]  ;;  %p1573_p6 = pneg %p1572_p0 }
  0x46   : > { %1387 = vmatmul.mubr.msk.f32.vlgmr.msra.gmra.mrb[0].mxu0 %vm477_vm0, %v449_v28  ;;  %474 = vperm.xlu1 %1539, %v456_v30  }
  0x47   : > { %1391 = vmatmul.mubr.msk.f32.vlgmr.msra.gmra.mrb[0].mxu1 %vm477_vm0, %v449_v28  ;;  %560 = vmatprep.mubr.f32.mxu0 %v1657_v0 }
  0x48   : > { %649 = vmatprep.mubr.f32.mxu1 %v1657_v0 }
  0x49   : > { %694 = vperm.xlu0 %1538, %v688_v32  }
  0x4a   : > { %1388 = vmatmul.mubr.msk.f32.gmra.mrb[2].mxu0 %vm477_vm0, %v450_v31  ;;  %699 = vperm.xlu1 %1539, %v689_v33  }
  0x4b   : > { %1392 = vmatmul.mubr.msk.f32.gmra.mrb[2].mxu1 %vm477_vm0, %v450_v31  ;;  %566 = vmatprep.mubr.f32.mxu0 %v1657_v0 }
  0x4c   : > { %655 = vmatprep.mubr.f32.mxu1 %v1657_v0 }
  0x4d   : > { %704 = vperm.xlu0 %1538, %v690_v35  }
  0x4e   : > { %1389 = vmatmul.mubr.msk.f32.gmra.mrb[4].mxu0 %vm477_vm0, %v451_v34  ;;  %709 = vperm.xlu1 %1539, %v691_v36  }
  0x4f   : > { %1393 = vmatmul.mubr.msk.f32.gmra.mrb[4].mxu1 %vm477_vm0, %v451_v34  ;;  %572 = vmatprep.mubr.f32.mxu0 %v1657_v0 }
  0x50   : > { %661 = vmatprep.mubr.f32.mxu1 %v1657_v0 }
  0x51   : > { %930 = vperm.xlu0 %1538, %v923_v38  }
  0x52   : > { %1390 = vmatmul.mubr.msk.f32.gmra.mrb[6].mxu0 %vm477_vm0, %v452_v37  ;;  %935 = vperm.xlu1 %1539, %v924_v39  }
  0x53   : > { %1394 = vmatmul.mubr.msk.f32.gmra.mrb[6].mxu1 %vm477_vm0, %v452_v37  ;;  %788 = vmatprep.mubr.f32.mxu0 %v1657_v0 }
  0x54   : > { %877 = vmatprep.mubr.f32.mxu1 %v1657_v0 }
  0x55   : > { %940 = vperm.xlu0 %1538, %v925_v40  }
  0x56   : > { %945 = vperm.xlu1 %1539, %v926_v41  }
  0x59   : > { %950 = vperm.xlu0 %1538, %v927_v42  }
  0xc0   : > { %v460_v43 = vpop.permute.xlu0 %459 }
  0xc1   : > { %v470_v57 = vpop.permute.xlu1 %469 }
  0xc4   : > { %v465_v49 = vpop.permute.xlu0 %464 }
  0xc5   : > { %v475_v32 = vpop.permute.xlu1 %474 }
 0x119   : > { %v556_v44 = vpop.f32.mrb[0].mxu0 }
 0x11a   : > { %v645_v45 = vpop.f32.mrb[0].mxu1  ;;  %v558_v46 = vpop.f32.mrb[1].mxu0  ;;  %v557_v48 = vadd.f32 %v556_v44, %v460_v43 }
 0x11b   : > { %v647_v47 = vpop.f32.mrb[1].mxu1  ;;  %v646_v50 = vadd.f32 %v645_v45, %v460_v43  ;;  %v559_v51 = vadd.f32 %v558_v46, %v460_v43 }
 0x11c   : > { %v648_v53 = vadd.f32 %v647_v47, %v460_v43  ;;  %v668_v61 = vmax.f32 %v557_v48, 0.0 }
 0x11d   : > { %v562_v52 = vpop.f32.mrb[2].mxu0  ;;  %v670_v1 = vmax.f32 %v646_v50, 0.0  ;;  %v669_v5 = vmax.f32 %v559_v51, 0.0 }
 0x11e   : > { %v563_v54 = vadd.f32 %v562_v52, %v465_v49  ;;  %v651_v55 = vpop.f32.mrb[2].mxu1  ;;  %v564_v56 = vpop.f32.mrb[3].mxu0  ;;  %v671_v18 = vmax.f32 %v648_v53, 0.0 }
 0x11f   : > { %v652_v58 = vadd.f32 %v651_v55, %v465_v49  ;;  %v565_v59 = vadd.f32 %v564_v56, %v465_v49  ;;  %v653_v60 = vpop.f32.mrb[3].mxu1  ;;  %v684_v56 = vld [vmem:[%s2134_s4] sm:$0xff] }
 0x120   : > { %v672_v62 = vmax.f32 %v563_v54, 0.0  ;;  %v654_v63 = vadd.f32 %v653_v60, %v465_v49 }
 0x121   : > { %v674_v9 = vmax.f32 %v652_v58, 0.0  ;;  %v673_v10 = vmax.f32 %v565_v59, 0.0  ;;  %v568_v14 = vpop.f32.mrb[4].mxu0  ;;  %v686_v58 = vld [vmem:[%s2134_s4 + $0x10] sm:$0xff]  ;;  %v687_v59 = vld [vmem:[%s2134_s4 + $0x18] sm:$0xff] }
 0x122   : > { %v1440_v19 = vpack.c.bf16 %v672_v62, %v668_v61  ;;  %v675_v23 = vmax.f32 %v654_v63, 0.0  ;;  %v657_v25 = vpop.f32.mrb[4].mxu1  ;;  %v570_v26 = vpop.f32.mrb[5].mxu0  ;;  %v569_v31 = vadd.f32 %v568_v14, %v470_v57 }
 0x123   : > { %v1448_v27 = vpack.c.bf16 %v674_v9, %v670_v1  ;;  %v1438_v28 = vpack.c.bf16 %v673_v10, %v669_v5  ;;  %v659_v29 = vpop.f32.mrb[5].mxu1  ;;  %v658_v33 = vadd.f32 %v657_v25, %v470_v57  ;;  %v571_v34 = vadd.f32 %v570_v26, %v470_v57  ;;  %v695_v63 = vpop.permute.xlu0 %694 }
 0x124   : > { %v1446_v30 = vpack.c.bf16 %v675_v23, %v671_v18  ;;  %v660_v36 = vadd.f32 %v659_v29, %v470_v57  ;;  %v676_v43 = vmax.f32 %v569_v31, 0.0  ;;  %v685_v57 = vld [vmem:[%s2134_s4 + $0x8] sm:$0xff]  ;;  %v700_v9 = vpop.permute.xlu1 %699 }
 0x125   : > { %v574_v35 = vpop.f32.mrb[6].mxu0  ;;  %1439 = vmatprep.subr.bf16.mxu0 %v1438_v28  ;;  %v678_v46 = vmax.f32 %v658_v33, 0.0  ;;  %v677_v47 = vmax.f32 %v571_v34, 0.0 }
 0x126   : > { %v575_v37 = vadd.f32 %v574_v35, %v475_v32  ;;  %v663_v38 = vpop.f32.mrb[6].mxu1  ;;  %1447 = vmatprep.subr.bf16.mxu1 %v1446_v30  ;;  %v576_v39 = vpop.f32.mrb[7].mxu0  ;;  %1441 = vmatpush1.bf16.msra.mxu0 %v1440_v19  ;;  %v679_v50 = vmax.f32 %v660_v36, 0.0 }
 0x127   : > { %v664_v40 = vadd.f32 %v663_v38, %v475_v32  ;;  %v577_v41 = vadd.f32 %v576_v39, %v475_v32  ;;  %v665_v42 = vpop.f32.mrb[7].mxu1  ;;  %1449 = vmatpush1.bf16.msra.mxu1 %v1448_v27 }
 0x128   : > { %v680_v44 = vmax.f32 %v575_v37, 0.0  ;;  %v666_v45 = vadd.f32 %v665_v42, %v475_v32 }
 0x129   : > { %v682_v48 = vmax.f32 %v664_v40, 0.0  ;;  %v681_v49 = vmax.f32 %v577_v41, 0.0 }
 0x12a   : > { %v1444_v51 = vpack.c.bf16 %v680_v44, %v676_v43  ;;  %v683_v52 = vmax.f32 %v666_v45, 0.0  ;;  %v705_v43 = vpop.permute.xlu0 %704 }
 0x12b   : > { %v1452_v53 = vpack.c.bf16 %v682_v48, %v678_v46  ;;  %v1442_v54 = vpack.c.bf16 %v681_v49, %v677_v47  ;;  %v710_v49 = vpop.permute.xlu1 %709 }
 0x12c   : > { %v1450_v55 = vpack.c.bf16 %v683_v52, %v679_v50 }
 0x12d   : > { %1443 = vmatprep.subr.bf16.mxu0 %v1442_v54 }
 0x12e   : > { %1451 = vmatprep.subr.bf16.mxu1 %v1450_v55  ;;  %1445 = vmatpush1.bf16.msra.mxu0 %v1444_v51 }
 0x12f   : > { %1453 = vmatpush1.bf16.msra.mxu1 %v1452_v53 }
 0x131   : > { %1395 = vmatmul.mubr.msk.f32.vlgmr.msra.gmra.mrb[8].mxu0 %vm477_vm0, %v684_v56 }
 0x132   : > { %1399 = vmatmul.mubr.msk.f32.vlgmr.msra.gmra.mrb[8].mxu1 %vm477_vm0, %v684_v56  ;;  %794 = vmatprep.mubr.f32.mxu0 %v1657_v0 }
 0x133   : > { %883 = vmatprep.mubr.f32.mxu1 %v1657_v0 }
 0x135   : > { %1396 = vmatmul.mubr.msk.f32.gmra.mrb[10].mxu0 %vm477_vm0, %v685_v57 }
 0x136   : > { %1400 = vmatmul.mubr.msk.f32.gmra.mrb[10].mxu1 %vm477_vm0, %v685_v57  ;;  %800 = vmatprep.mubr.f32.mxu0 %v1657_v0 }
 0x137   : > { %889 = vmatprep.mubr.f32.mxu1 %v1657_v0 }
 0x139   : > { %1397 = vmatmul.mubr.msk.f32.gmra.mrb[12].mxu0 %vm477_vm0, %v686_v58 }
 0x13a   : > { %1401 = vmatmul.mubr.msk.f32.gmra.mrb[12].mxu1 %vm477_vm0, %v686_v58  ;;  %806 = vmatprep.mubr.f32.mxu0 %v1657_v0 }
 0x13b   : > { %895 = vmatprep.mubr.f32.mxu1 %v1657_v0 }
 0x13d   : > { %1398 = vmatmul.mubr.msk.f32.gmra.mrb[14].mxu0 %vm477_vm0, %v687_v59 }
 0x13e   : > { %1402 = vmatmul.mubr.msk.f32.gmra.mrb[14].mxu1 %vm477_vm0, %v687_v59  ;;  %1032 = vmatprep.mubr.f32.mxu0 %v1657_v0 }
 0x13f   : > { %1127 = vmatprep.mubr.f32.mxu1 %v1657_v0 }
 0x204   : > { %v790_v60 = vpop.f32.mrb[8].mxu0 }
 0x205   : > { %v879_v61 = vpop.f32.mrb[8].mxu1  ;;  %v792_v62 = vpop.f32.mrb[9].mxu0  ;;  %v791_v5 = vadd.f32 %v790_v60, %v695_v63 }
 0x206   : > { %v881_v1 = vpop.f32.mrb[9].mxu1  ;;  %v880_v10 = vadd.f32 %v879_v61, %v695_v63  ;;  %v793_v14 = vadd.f32 %v792_v62, %v695_v63 }
 0x207   : > { %v882_v19 = vadd.f32 %v881_v1, %v695_v63  ;;  %v902_v30 = vmax.f32 %v791_v5, 0.0 }
 0x208   : > { %v796_v18 = vpop.f32.mrb[10].mxu0  ;;  %v904_v33 = vmax.f32 %v880_v10, 0.0  ;;  %v903_v34 = vmax.f32 %v793_v14, 0.0 }
 0x209   : > { %v797_v23 = vadd.f32 %v796_v18, %v700_v9  ;;  %v885_v25 = vpop.f32.mrb[10].mxu1  ;;  %v798_v26 = vpop.f32.mrb[11].mxu0  ;;  %v905_v38 = vmax.f32 %v882_v19, 0.0 }
 0x20a   : > { %v886_v27 = vadd.f32 %v885_v25, %v700_v9  ;;  %v799_v28 = vadd.f32 %v798_v26, %v700_v9  ;;  %v887_v29 = vpop.f32.mrb[11].mxu1  ;;  %v918_v26 = vld [vmem:[%s2136_s6] sm:$0xff] }
 0x20b   : > { %v906_v31 = vmax.f32 %v797_v23, 0.0  ;;  %v888_v32 = vadd.f32 %v887_v29, %v700_v9  ;;  %v921_v29 = vld [vmem:[%s2136_s6 + $0x18] sm:$0xff] }
 0x20c   : > { %v908_v35 = vmax.f32 %v886_v27, 0.0  ;;  %v907_v36 = vmax.f32 %v799_v28, 0.0  ;;  %v802_v37 = vpop.f32.mrb[12].mxu0  ;;  %v919_v27 = vld [vmem:[%s2136_s6 + $0x8] sm:$0xff]  ;;  %v920_v28 = vld [vmem:[%s2136_s6 + $0x10] sm:$0xff] }
 0x20d   : > { %v1456_v39 = vpack.c.bf16 %v906_v31, %v902_v30  ;;  %v909_v40 = vmax.f32 %v888_v32, 0.0  ;;  %v891_v41 = vpop.f32.mrb[12].mxu1  ;;  %v804_v42 = vpop.f32.mrb[13].mxu0  ;;  %v803_v48 = vadd.f32 %v802_v37, %v705_v43  ;;  %v922_v30 = vld [vmem:[%s2136_s6 + $0x20] sm:$0xff] }
 0x20e   : > { %v1464_v44 = vpack.c.bf16 %v908_v35, %v904_v33  ;;  %v1454_v45 = vpack.c.bf16 %v907_v36, %v903_v34  ;;  %v893_v46 = vpop.f32.mrb[13].mxu1  ;;  %v892_v50 = vadd.f32 %v891_v41, %v705_v43  ;;  %v805_v51 = vadd.f32 %v804_v42, %v705_v43  ;;  %v931_v31 = vpop.permute.xlu0 %930  ;;  %v448_v42 = vld [vmem:[%s417_s27 + $0x8] sm:$0x77] }
 0x20f   : > { %v1462_v47 = vpack.c.bf16 %v909_v40, %v905_v38  ;;  %v894_v53 = vadd.f32 %v893_v46, %v705_v43  ;;  %v910_v60 = vmax.f32 %v803_v48, 0.0  ;;  %v936_v40 = vpop.permute.xlu1 %935 }
 0x210   : > { %v808_v52 = vpop.f32.mrb[14].mxu0  ;;  %1455 = vmatprep.subr.bf16.mxu0 %v1454_v45  ;;  %v912_v63 = vmax.f32 %v892_v50, 0.0  ;;  %v911_v1 = vmax.f32 %v805_v51, 0.0 }
 0x211   : > { %v809_v54 = vadd.f32 %v808_v52, %v710_v49  ;;  %v897_v55 = vpop.f32.mrb[14].mxu1  ;;  %1463 = vmatprep.subr.bf16.mxu1 %v1462_v47  ;;  %v810_v56 = vpop.f32.mrb[15].mxu0  ;;  %1457 = vmatpush1.bf16.msra.mxu0 %v1456_v39  ;;  %v913_v10 = vmax.f32 %v894_v53, 0.0 }
 0x212   : > { %v898_v57 = vadd.f32 %v897_v55, %v710_v49  ;;  %v811_v58 = vadd.f32 %v810_v56, %v710_v49  ;;  %v899_v59 = vpop.f32.mrb[15].mxu1  ;;  %1465 = vmatpush1.bf16.msra.mxu1 %v1464_v44  ;;  %v941_v55 = vpop.permute.xlu0 %940 }
 0x213   : > { %v914_v61 = vmax.f32 %v809_v54, 0.0  ;;  %v900_v62 = vadd.f32 %v899_v59, %v710_v49 }
 0x214   : > { %v916_v5 = vmax.f32 %v898_v57, 0.0  ;;  %v915_v9 = vmax.f32 %v811_v58, 0.0 }
 0x215   : > { %v1460_v14 = vpack.c.bf16 %v914_v61, %v910_v60  ;;  %v917_v18 = vmax.f32 %v900_v62, 0.0 }
 0x216   : > { %v1468_v19 = vpack.c.bf16 %v916_v5, %v912_v63  ;;  %v1458_v23 = vpack.c.bf16 %v915_v9, %v911_v1  ;;  %v946_v5 = vpop.permute.xlu1 %945 }
 0x217   : > { %v1466_v25 = vpack.c.bf16 %v917_v18, %v913_v10 }
 0x218   : > { %1459 = vmatprep.subr.bf16.mxu0 %v1458_v23 }
 0x219   : > { %1467 = vmatprep.subr.bf16.mxu1 %v1466_v25  ;;  %1461 = vmatpush1.bf16.msra.mxu0 %v1460_v14 }
 0x21a   : > { %1469 = vmatpush1.bf16.msra.mxu1 %v1468_v19 }
 0x21c   : > { %1403 = vmatmul.mubr.msk.f32.vlgmr.msra.gmra.mrb[16].mxu0 %vm477_vm0, %v918_v26 }
 0x21d   : > { %1408 = vmatmul.mubr.msk.f32.vlgmr.msra.gmra.mrb[16].mxu1 %vm477_vm0, %v918_v26  ;;  %1038 = vmatprep.mubr.f32.mxu0 %v1657_v0 }
 0x21e   : > { %1133 = vmatprep.mubr.f32.mxu1 %v1657_v0 }
 0x220   : > { %1404 = vmatmul.mubr.msk.f32.gmra.mrb[18].mxu0 %vm477_vm0, %v919_v27 }
 0x221   : > { %1409 = vmatmul.mubr.msk.f32.gmra.mrb[18].mxu1 %vm477_vm0, %v919_v27  ;;  %1044 = vmatprep.mubr.f32.mxu0 %v1657_v0  ;;  %v951_v27 = vpop.permute.xlu0 %950 }
 0x222   : > { %1139 = vmatprep.mubr.f32.mxu1 %v1657_v0 }
 0x224   : > { %1405 = vmatmul.mubr.msk.f32.gmra.mrb[20].mxu0 %vm477_vm0, %v920_v28 }
 0x225   : > { %1410 = vmatmul.mubr.msk.f32.gmra.mrb[20].mxu1 %vm477_vm0, %v920_v28  ;;  %1050 = vmatprep.mubr.f32.mxu0 %v1657_v0 }
 0x226   : > { %1145 = vmatprep.mubr.f32.mxu1 %v1657_v0 }
 0x228   : > { %1406 = vmatmul.mubr.msk.f32.gmra.mrb[22].mxu0 %vm477_vm0, %v921_v29 }
 0x229   : > { %1411 = vmatmul.mubr.msk.f32.gmra.mrb[22].mxu1 %vm477_vm0, %v921_v29  ;;  %1056 = vmatprep.mubr.f32.mxu0 %v1657_v0 }
 0x22a   : > { %1151 = vmatprep.mubr.f32.mxu1 %v1657_v0  ;;  %v447_v0 = vld [vmem:[%s417_s27] sm:$0x77]  ;;  %s1659_s27 = smov [#allocation5]  }
 0x22b   : > { %s1574_s19 = sshll.u32 %s1659_s27, 4  ;;  %s1575_s19 = int_to_ptr.vmem [resolvable:$false] %s1574_s19 }
 0x22c   : > { %1407 = vmatmul.mubr.msk.f32.gmra.mrb[24].mxu0 %vm477_vm0, %v922_v30  ;;  %s1576_s26 = scalar_lea.vmem %s1575_s19, 4096  ;;  %p1577_p13 = scmp.lt.s32.totalorder %s2076_s21, %s1575_s19 }
 0x22d   : > { %1412 = vmatmul.mubr.msk.f32.gmra.mrb[24].mxu1 %vm477_vm0, %v922_v30  ;;  %p1578_p2 = scmp.lt.s32.totalorder %s1576_s26, %s1570_s29 }
 0x22f   : > { %p1579_p5 = por %p1578_p2, %p1577_p13 }
 0x231   : > { %p1580_p4 = pnand %p1579_p5, %p1573_p6 }
 0x2ef   : > { %v1034_v32 = vpop.f32.mrb[16].mxu0 }
 0x2f0   : > { %v1035_v33 = vadd.f32 %v1034_v32, %v931_v31  ;;  %v1129_v34 = vpop.f32.mrb[16].mxu1  ;;  %v1036_v35 = vpop.f32.mrb[17].mxu0 }
 0x2f1   : > { %v1130_v36 = vadd.f32 %v1129_v34, %v931_v31  ;;  %v1037_v37 = vadd.f32 %v1036_v35, %v931_v31  ;;  %v1131_v38 = vpop.f32.mrb[17].mxu1 }
 0x2f2   : > { %v1132_v39 = vadd.f32 %v1131_v38, %v931_v31 }
 0x2f3   : > { %v1162_v41 = vcombine.low %v1035_v33, %v1037_v37  ;;  %v1040_v43 = vpop.f32.mrb[18].mxu0 }
 0x2f4   : > { %v1163_v44 = vcombine.low %v1130_v36, %v1132_v39  ;;  %v1041_v45 = vadd.f32 %v1040_v43, %v936_v40  ;;  %v1135_v46 = vpop.f32.mrb[18].mxu1  ;;  %v1042_v47 = vpop.f32.mrb[19].mxu0 }
 0x2f5   : > { %v1166_v48 = vadd.f32 %v1162_v41, %v447_v0  ;;  %v1136_v49 = vadd.f32 %v1135_v46, %v936_v40  ;;  %v1043_v50 = vadd.f32 %v1042_v47, %v936_v40  ;;  %v1137_v51 = vpop.f32.mrb[19].mxu1 }
 0x2f6   : > { %v1167_v52 = vadd.f32 %v1163_v44, %v448_v42  ;;  %v1170_v53 = vadd.f32 %v1041_v45, %v1853_v7  ;;  %v1138_v54 = vadd.f32 %v1137_v51, %v936_v40 }
 0x2f7   : > { %1168 = vst [vmem:[%s428_s28] sm:$0x77] %v1166_v48  ;;  %v1172_v56 = vadd.f32 %v1136_v49, %v1863_v11  ;;  %v1171_v57 = vadd.f32 %v1043_v50, %v1839_v2  ;;  %v1046_v58 = vpop.f32.mrb[20].mxu0 }
 0x2f8   : > { %1169 = vst [vmem:[%s428_s28 + $0x8] sm:$0x77] %v1167_v52  ;;  %1186 = vst [vmem:[%s2043_s17] sm:$0xff] %v1170_v53  ;;  %v1173_v59 = vadd.f32 %v1138_v54, %v1845_v4  ;;  %v1047_v7 = vadd.f32 %v1046_v58, %v941_v55  ;;  %v1141_v60 = vpop.f32.mrb[20].mxu1  ;;  %v1048_v61 = vpop.f32.mrb[21].mxu0 }
 0x2f9   : > { %1188 = vst [vmem:[%s2043_s17 + $0x10] sm:$0xff] %v1172_v56  ;;  %1187 = vst [vmem:[%s2043_s17 + $0x8] sm:$0xff] %v1171_v57  ;;  %v1142_v2 = vadd.f32 %v1141_v60, %v941_v55  ;;  %v1049_v11 = vadd.f32 %v1048_v61, %v941_v55  ;;  %v1143_v62 = vpop.f32.mrb[21].mxu1 }
 0x2fa   : > { %1189 = vst [vmem:[%s2043_s17 + $0x18] sm:$0xff] %v1173_v59  ;;  %v1174_v63 = vadd.f32 %v1047_v7, %v1856_v8  ;;  %v1144_v1 = vadd.f32 %v1143_v62, %v941_v55 }
 0x2fb   : > { %v1176_v9 = vadd.f32 %v1142_v2, %v1866_v12  ;;  %v1175_v4 = vadd.f32 %v1049_v11, %v1842_v3  ;;  %v1052_v10 = vpop.f32.mrb[22].mxu0 }
 0x2fc   : > { %1190 = vst [vmem:[%s2043_s17 + $0x20] sm:$0xff] %v1174_v63  ;;  %v1177_v14 = vadd.f32 %v1144_v1, %v1850_v6  ;;  %v1053_v18 = vadd.f32 %v1052_v10, %v946_v5  ;;  %v1147_v19 = vpop.f32.mrb[22].mxu1  ;;  %v1054_v23 = vpop.f32.mrb[23].mxu0 }
 0x2fd   : > { %1192 = vst [vmem:[%s2043_s17 + $0x30] sm:$0xff] %v1176_v9  ;;  %1191 = vst [vmem:[%s2043_s17 + $0x28] sm:$0xff] %v1175_v4  ;;  %v1148_v25 = vadd.f32 %v1147_v19, %v946_v5  ;;  %v1055_v8 = vadd.f32 %v1054_v23, %v946_v5  ;;  %v1149_v26 = vpop.f32.mrb[23].mxu1 }
 0x2fe   : > { %1193 = vst [vmem:[%s2043_s17 + $0x38] sm:$0xff] %v1177_v14  ;;  %v1178_v3 = vadd.f32 %v1053_v18, %v1887_v20  ;;  %v1150_v12 = vadd.f32 %v1149_v26, %v946_v5 }
 0x2ff   : > { %v1180_v6 = vadd.f32 %v1148_v25, %v1893_v22  ;;  %v1179_v28 = vadd.f32 %v1055_v8, %v1869_v13  ;;  %v1058_v29 = vpop.f32.mrb[24].mxu0 }
 0x300   : > { %1194 = vst [vmem:[%s2043_s17 + $0x40] sm:$0xff] %v1178_v3  ;;  %v1181_v30 = vadd.f32 %v1150_v12, %v1877_v16  ;;  %v1059_v31 = vadd.f32 %v1058_v29, %v951_v27  ;;  %v1153_v32 = vpop.f32.mrb[24].mxu1  ;;  %v1060_v33 = vpop.f32.mrb[25].mxu0 }
 0x301   : > { %1196 = vst [vmem:[%s2043_s17 + $0x50] sm:$0xff] %v1180_v6  ;;  %1195 = vst [vmem:[%s2043_s17 + $0x48] sm:$0xff] %v1179_v28  ;;  %v1154_v20 = vadd.f32 %v1153_v32, %v951_v27  ;;  %v1061_v22 = vadd.f32 %v1060_v33, %v951_v27  ;;  %v1155_v34 = vpop.f32.mrb[25].mxu1 }
 0x302   : > { %1197 = vst [vmem:[%s2043_s17 + $0x58] sm:$0xff] %v1181_v30  ;;  %v1182_v13 = vadd.f32 %v1059_v31, %v1890_v21  ;;  %v1156_v16 = vadd.f32 %v1155_v34, %v951_v27 }
 0x303   : > { %v1184_v35 = vadd.f32 %v1154_v20, %v1898_v24  ;;  %v1183_v36 = vadd.f32 %v1061_v22, %v1874_v15 }
 0x304   : > { %1198 = vst [vmem:[%s2043_s17 + $0x60] sm:$0xff] %v1182_v13  ;;  %v1185_v37 = vadd.f32 %v1156_v16, %v1880_v17 }
 0x305   : > { %1200 = vst [vmem:[%s2043_s17 + $0x70] sm:$0xff] %v1184_v35  ;;  %1199 = vst [vmem:[%s2043_s17 + $0x68] sm:$0xff] %v1183_v36 }
 0x306   : > { %1201 = vst [vmem:[%s2043_s17 + $0x78] sm:$0xff] %v1185_v37 }
 0x307   : > { %1583 = shalt.err (!%p1580_p4)
}
 0x308   : > { %s1584_s28 = scalar_lea.hbm %s2074_s18, 2048  ;;  %s1588_s12 = scalar_lea.hbm %s2139_s9, 4096 }
 0x309   : > { %p1585_p7 = scmp.ne.s32.totalorder %s2074_s18, %s1584_s28  ;;  %p1589_p1 = scmp.lt.u32.totalorder %s2074_s18, %s2139_s9 }
 0x30a   : > { %p1590_p3 = scmp.lt.u32.totalorder %s1588_s12, %s1584_s28  ;;  %p1592_p9 = scmp.lt.u32.totalorder %s1584_s28, %s2074_s18 }
 0x30b   : > { %p1586_p10 = pnand %p1585_p7, %p2149_p11 }
 0x30c   : > { %p1591_p8 = por %p1590_p3, %p1589_p1 }
 0x30d   : > { %p1587_p12 = pneg %p1586_p10 }
 0x30e   : > { %p1593_p0 = por %p1592_p9, %p1591_p8 }
 0x310   : > { %p1594_p6 = pnand %p1593_p0, %p1587_p12 }
 0x312   : > { %1597 = shalt.err (!%p1594_p6)
}
 0x313   : > { %s1660_s29 = smov 512   ;;  %s1661_s19 = smov 32  }
 0x314   : > { %1472 = dma.vmem_to_hbm [thread:$0]  (%p2149_p11), %s2076_s21, 2048, %s2074_s18, %s1212_s20, %s1660_s29, %s1660_s29, %s1661_s19  }
 0x315 PF: > { %s1258_s26 = sand.u32 1, %s1632_s30   ;;  %p2150_p13 = scmp.ne.s32.totalorder %s2146_s24, 0 }
 0x316   : > { %p2151_p2 = scmp.ge.s32.totalorder %s1652_s14, 2  ;;  %s1259_s28 = scalar_lea.sflag [#allocation4], %s1258_s26 }
 0x318   : > { %p1479_p5 = pnand %p2151_p2, %p2150_p13 }
 0x31a   : > { %1627 = dma.done.wait (!%p1479_p5), %s1259_s28, 2048  }
 0x31b   : > { %1629 = vsyncadd (!%p1479_p5), %s1259_s28, 4294965248  ;;  %s26_s14 = sadd.s32 1, %s1652_s14   ;;  %s2152_s22 = sld [smem:[#allocation8_spill]] }
 0x31c   : > { %p23_p4 = scmp.ge.s32.totalorder %s26_s14, 4   ;;  %s2153_s30 = smov %s1636_s10 }
 0x31d   : > { %s2154_s10 = smov %s1640_s11  ;;  %s2155_s11 = smov %s1768_s23 }
 0x31e   : > { %s2156_s12 = smov %s1648_s13  ;;  %25 = sbr.rel (!%p23_p4) target bundleno = 6 (0x6), region = 112 }
 0x321   : > { %s2157_s13 = smov %s2152_s22 }
 0x325   :  { %1264 = vsyncpa [#allocation3], 1 }
 0x326   :  { %1266 = vsyncpa [#allocation3 + $0x1], 1 }
 0x327   :  { %1267 = vsyncpa [#allocation4], 1 }
 0x328   :  { %1269 = vsyncpa [#allocation4 + $0x1], 1 }

// kernel: tpu_custom_call.1
= control target key start
LH: loop header
LB: loop body
LE: loop exit
PB: predicated region body
PF: predicated region fallthrough
CT: control target
= control target key end

     0   :  { %15 = vsyncpa [#allocation3], 0  ;;  %s2130_s0 = inlined_call_operand.vmem [shape: f32[2,3,512], index: 0, kind: input, shape index: {}]   ;;  %s2131_s1 = inlined_call_operand.hbm [shape: f32[2,32,512], index: 1, kind: input, shape index: {}]   ;;  %s2132_s2 = inlined_call_operand.vmem [shape: f32[32,32], index: 2, kind: input, shape index: {}]   ;;  %s2133_s3 = inlined_call_operand.vmem [shape: f32[32,1], index: 3, kind: input, shape index: {}]   ;;  %s2134_s4 = inlined_call_operand.vmem [shape: f32[32,32], index: 4, kind: input, shape index: {}]   ;;  %s2135_s5 = inlined_call_operand.vmem [shape: f32[32,1], index: 5, kind: input, shape index: {}]   ;;  %s2136_s6 = inlined_call_operand.vmem [shape: f32[40,32], index: 6, kind: input, shape index: {}]   ;;  %s2137_s7 = inlined_call_operand.vmem [shape: f32[40,1], index: 7, kind: input, shape index: {}]   ;;  %s2138_s8 = inlined_call_operand.vmem [shape: f32[2,3,512], index: 8, kind: output, shape index: {0}]   ;;  %s2139_s9 = inlined_call_operand.hbm [shape: f32[2,32,512], index: 9, kind: output, shape index: {1}]  }
   0x1   :  { %17 = vsyncpa [#allocation3 + $0x1], 0 }
   0x2   :  { %18 = vsyncpa [#allocation4], 0 }
   0x3   :  { %20 = vsyncpa [#allocation4 + $0x1], 0  ;;  %s1712_s30 = smov 0   ;;  %s1714_s10 = smov 0  }
   0x4   :  { %s1716_s11 = smov 0   ;;  %s1718_s12 = smov 0  }
   0x5   :  { %s1720_s13 = smov 0   ;;  %s1722_s14 = smov 0  }
   0x6 LB: > { %s1373_s15 = sadd.s32 4294967295, %s1652_s14   ;;  %s1374_s16 = sadd.s32 4294967294, %s1652_s14   ;;  %s1652_s14 = sphi %s1722_s14, %s26_s14   ;;  %s1648_s13 = sphi %s1720_s13, %s2157_s13   ;;  %s1644_s12 = sphi %s1718_s12, %s2156_s12   ;;  %s1640_s11 = sphi %s1716_s11, %s2155_s11   ;;  %s1636_s10 = sphi %s1714_s10, %s2154_s10   ;;  %s1632_s30 = sphi %s1712_s30, %s2153_s30  }
   0x7   : > { %s38_s17 = sadd.s32 1, %s1648_s13  ;;  %s75_s18 = sadd.s32 1, %s1640_s11 }
   0x8   : > { %p40_p0 = scmp.ge.s32.totalorder %s38_s17, 2  ;;  %p82_p1 = scmp.ne.s32.totalorder %s1640_s11, %s1636_s10 }
   0x9   : > { %p83_p2 = scmp.eq.s32.totalorder %s1652_s14, 0  ;;  %p88_p3 = scmp.ne.s32.totalorder %s1636_s10, %s1632_s30 }
   0xa   : > { %s2159_s17 = smov (%p40_p0, %s38_s17), 0  ;;  %p89_p5 = scmp.eq.s32.totalorder %s1373_s15, 0 }
   0xb   : > { %2142 = sst [smem:[#allocation8_spill]] %s2159_s17  ;;  %p1753_p4 = por %p83_p2, %p82_p1 }
   0xc   : > { %s70_s20 = ssub.s32 %s1648_s13, %s2159_s17  ;;  %p268_p6 = scmp.eq.s32.totalorder %s1373_s15, 1 }
   0xd   : > { %p73_p7 = scmp.eq.s32.totalorder %s70_s20, 0  ;;  %p1759_p8 = por %p89_p5, %p88_p3 }
   0xe   : > { %p1763_p9 = por %p268_p6, %p82_p1  ;;  %p274_p10 = scmp.eq.s32.totalorder %s1374_s16, 1 }
   0xf   : > { %s1768_s23 = scalar_select %p73_p7, %s1640_s11, %s75_s18  }
  0x10   : > { %s2145_s22 = scalar_select %p1763_p9, 1, 0 }
  0x11   : > { %p1770_p11 = por %p274_p10, %p88_p3  ;;  %p1482_p13 = scmp.lt.s32.totalorder %s1652_s14, 2 }
  0x12   : > { %s325_s25 = sand.u32 1, %s1640_s11   ;;  %s1418_s27 = sshll.u32 %s1648_s13, 11 }
  0x13   : > { %s2146_s24 = scalar_select %p1770_p11, 1, 0 }
  0x14   : > { %s1377_s26 = sshll.u32 %s325_s25, 7  ;;  %s1781_s15 = scalar_lea.hbm %s2131_s1, %s1418_s27 }
  0x15   : > { %s329_s16 = scalar_lea.vmem [#allocation2], %s1377_s26  ;;  %p1787_p0 = pnand %p1482_p13, %p1753_p4 }
  0x16   : > { %s338_s18 = sshll.u32 %s329_s16, 4  ;;  %s1792_s17 = scalar_lea.sflag [#allocation3], %s325_s25  ;;  %s1783_s18 = int_to_ptr.vmem [resolvable:$true] %s338_s18 }
  0x17   : > { %s1540_s27 = scalar_lea.hbm %s1781_s15, 2048  ;;  %p1542_p3 = pneg %p1787_p0 }
  0x18   : > { %p1541_p2 = scmp.ne.s32.totalorder %s1781_s15, %s1540_s27  ;;  %s1545_s19 = scalar_lea.hbm %s2131_s1, 4096 }
  0x19   : > { %p1546_p4 = scmp.lt.u32.totalorder %s1781_s15, %s2131_s1  ;;  %p1547_p7 = scmp.lt.u32.totalorder %s1545_s19, %s1540_s27 }
  0x1a   : > { %p1543_p5 = pnand %p1542_p3, %p1541_p2  ;;  %p1549_p13 = scmp.lt.u32.totalorder %s1540_s27, %s1781_s15 }
  0x1b   : > { %p1548_p10 = por %p1547_p7, %p1546_p4 }
  0x1c   : > { %p1544_p6 = pneg %p1543_p5 }
  0x1d   : > { %p1550_p12 = por %p1549_p13, %p1548_p10 }
  0x1f   : > { %p1551_p1 = pnand %p1550_p12, %p1544_p6 }
  0x21   : > { %1554 = shalt.err (!%p1551_p1)
}
  0x22   : > { %s1555_s25 = scalar_lea.vmem %s1783_s18, 2048  ;;  %s1654_s26 = smov [#allocation2]  }
  0x23   : > { %p1556_p2 = scmp.ne.s32.totalorder %s1783_s18, %s1555_s25  ;;  %s1560_s28 = sshll.u32 %s1654_s26, 4  ;;  %s1561_s28 = int_to_ptr.vmem [resolvable:$false] %s1560_s28 }
  0x24   : > { %s1562_s29 = scalar_lea.vmem %s1561_s28, 4096  ;;  %p1563_p9 = scmp.lt.s32.totalorder %s1783_s18, %s1561_s28 }
  0x25   : > { %p1558_p5 = pnand %p1556_p2, %p1542_p3  ;;  %p1564_p4 = scmp.lt.s32.totalorder %s1562_s29, %s1555_s25 }
  0x27   : > { %p1559_p11 = pneg %p1558_p5  ;;  %p1565_p7 = por %p1564_p4, %p1563_p9 }
  0x29   : > { %p1566_p10 = pnand %p1565_p7, %p1559_p11 }
  0x2b   : > { %1569 = shalt.err (!%p1566_p10)
}
  0x2c   : > { %s1655_s27 = smov 512   ;;  %s1656_s19 = smov 32  }
  0x2d   : > { %1477 = dma.hbm_to_vmem [thread:$0]  (!%p1787_p0), %s1781_s15, 2048, %s1783_s18, %s1792_s17, %s1655_s27, %s1655_s27, %s1656_s19  }
  0x2e   : > { %p346_p12 = scmp.lt.s32.totalorder %s1652_s14, 3  ;;  %p2148_p1 = scmp.ge.s32.totalorder %s1652_s14, 1 }
  0x30   : > { %p347_p3 = pnand %p2148_p1, %p346_p12 }
  0x31   : > { %s1824_s16 = sand.u32 (!%p347_p3), 1, %s1636_s10  }
  0x32   : > { %350 = sbr.rel (%p347_p3) target bundleno = 789 (0x315), region = 52  ;;  %s1381_s25 = sshll.u32 (!%p347_p3), %s1824_s16, 7 }
  0x33   : > { %s353_s26 = scalar_lea.sflag (!%p347_p3), [#allocation3], %s1824_s16  ;;  %s1830_s28 = scalar_lea.vmem (!%p347_p3), [#allocation2], %s1381_s25 }
  0x39   : > { %1623 = dma.done.wait (%p1759_p8), %s353_s26, 2048  }
  0x3a   : > { %1625 = vsyncadd (%p1759_p8), %s353_s26, 4294965248  ;;  %v1657_v0 = vmov 0.0   ;;  %v1658_v1 = vmov 0   ;;  %v1839_v2 = vld [vmem:[%s1830_s28 + $0x8] sm:$0xff]  ;;  %v1845_v4 = vld [vmem:[%s1830_s28 + $0x18] sm:$0xff]  ;;  %vm477_vm0 = vcmask 261120  }
  0x3b   : > { %554 = vmatprep.mubr.f32.mxu0 %v1657_v0  ;;  %643 = vmatprep.mubr.f32.mxu1 %v1657_v0  ;;  %v1842_v3 = vld [vmem:[%s1830_s28 + $0x28] sm:$0xff]  ;;  %v1850_v6 = vld [vmem:[%s1830_s28 + $0x38] sm:$0xff]  ;;  %v1853_v7 = vld [vmem:[%s1830_s28] sm:$0xff]  ;;  %p410_p8 = scmp.lt.s32.totalorder %s1644_s12, 1  ;;  %s2043_s17 = scalar_lea.vmem [#allocation5], %s1381_s25 }
  0x3c   : > { %1538 = vset.pattern.permute.xlu0 %v1658_v1  ;;  %1539 = vset.pattern.permute.xlu1 %v1658_v1  ;;  %v1422_v5 = vpack.c.bf16 %v1842_v3, %v1839_v2  ;;  %v1856_v8 = vld [vmem:[%s1830_s28 + $0x20] sm:$0xff]  ;;  %v1430_v9 = vpack.c.bf16 %v1850_v6, %v1845_v4  ;;  %v1863_v11 = vld [vmem:[%s1830_s28 + $0x10] sm:$0xff]  ;;  %v1869_v13 = vld [vmem:[%s1830_s28 + $0x48] sm:$0xff]  ;;  %s1421_s25 = sshll.u32 %s1644_s12, 11  ;;  %s1231_s21 = sshll.u32 %s2043_s17, 4  ;;  %s2076_s21 = int_to_ptr.vmem [resolvable:$true] %s1231_s21 }
  0x3d   : > { %v1424_v10 = vpack.c.bf16 %v1856_v8, %v1853_v7  ;;  %v1866_v12 = vld [vmem:[%s1830_s28 + $0x30] sm:$0xff]  ;;  %v1874_v15 = vld [vmem:[%s1830_s28 + $0x68] sm:$0xff]  ;;  %v1877_v16 = vld [vmem:[%s1830_s28 + $0x58] sm:$0xff]  ;;  %s411_s15 = scalar_select %p410_p8, %s1644_s12, 1 }
  0x3e   : > { %1423 = vmatprep.subr.bf16.mxu0 %v1422_v5  ;;  %v1432_v14 = vpack.c.bf16 %v1866_v12, %v1863_v11  ;;  %v1880_v17 = vld [vmem:[%s1830_s28 + $0x78] sm:$0xff]  ;;  %1431 = vmatprep.subr.bf16.mxu1 %v1430_v9  ;;  %v1426_v18 = vpack.c.bf16 %v1874_v15, %v1869_v13  ;;  %v1887_v20 = vld [vmem:[%s1830_s28 + $0x40] sm:$0xff]  ;;  %v1893_v22 = vld [vmem:[%s1830_s28 + $0x50] sm:$0xff]  ;;  %s1212_s20 = scalar_lea.sflag [#allocation4], %s1824_s16  ;;  %s1570_s29 = scalar_lea.vmem %s2076_s21, 2048 }
  0x3f   : > { %1425 = vmatpush1.bf16.msra.mxu0 %v1424_v10  ;;  %v1434_v19 = vpack.c.bf16 %v1880_v17, %v1877_v16  ;;  %v1890_v21 = vld [vmem:[%s1830_s28 + $0x60] sm:$0xff]  ;;  %v1898_v24 = vld [vmem:[%s1830_s28 + $0x70] sm:$0xff]  ;;  %v454_v29 = vld [vmem:[%s2133_s3 + $0x8] sm:$0xff]  ;;  %s1419_s18 = sshll.u32 %s411_s15, 4  ;;  %p1571_p9 = scmp.ne.s32.totalorder %s2076_s21, %s1570_s29 }
  0x40   : > { %1433 = vmatpush1.bf16.msra.mxu1 %v1432_v14  ;;  %v1428_v23 = vpack.c.bf16 %v1890_v21, %v1887_v20  ;;  %1427 = vmatprep.subr.bf16.mxu0 %v1426_v18  ;;  %v1436_v25 = vpack.c.bf16 %v1898_v24, %v1893_v22  ;;  %v453_v26 = vld [vmem:[%s2133_s3] sm:$0xff]  ;;  %v455_v27 = vld [vmem:[%s2133_s3 + $0x10] sm:$0xff]  ;;  %v456_v30 = vld [vmem:[%s2133_s3 + $0x18] sm:$0xff]  ;;  %s417_s27 = scalar_lea.vmem %s2130_s0, %s1419_s18  ;;  %s428_s28 = scalar_lea.vmem %s2138_s8, %s1419_s18 }
  0x41   : > { %1435 = vmatprep.subr.bf16.mxu1 %v1434_v19  ;;  %459 = vperm.xlu0 %1538, %v453_v26   ;;  %v449_v28 = vld [vmem:[%s2132_s2] sm:$0xff]  ;;  %v450_v31 = vld [vmem:[%s2132_s2 + $0x8] sm:$0xff]  ;;  %v451_v34 = vld [vmem:[%s2132_s2 + $0x10] sm:$0xff]  ;;  %s2074_s18 = scalar_lea.hbm %s2139_s9, %s1421_s25  ;;  %p2149_p11 = scmp.ne.s32.totalorder %s2145_s22, 0 }
  0x42   : > { %469 = vperm.xlu1 %1539, %v455_v27   ;;  %v688_v32 = vld [vmem:[%s2135_s5] sm:$0xff]  ;;  %v689_v33 = vld [vmem:[%s2135_s5 + $0x8] sm:$0xff]  ;;  %v690_v35 = vld [vmem:[%s2135_s5 + $0x10] sm:$0xff] }
  0x43   : > { %1429 = vmatpush1.bf16.msra.mxu0 %v1428_v23  ;;  %v691_v36 = vld [vmem:[%s2135_s5 + $0x18] sm:$0xff]  ;;  %v923_v38 = vld [vmem:[%s2137_s7] sm:$0xff]  ;;  %v924_v39 = vld [vmem:[%s2137_s7 + $0x8] sm:$0xff]  ;;  %p1572_p0 = pnand %p1571_p9, %p2149_p11 }
  0x44   : > { %1437 = vmatpush1.bf16.msra.mxu1 %v1436_v25  ;;  %v452_v37 = vld [vmem:[%s2132_s2 + $0x18] sm:$0xff]  ;;  %v925_v40 = vld [vmem:[%s2137_s7 + $0x10] sm:$0xff]  ;;  %v927_v42 = vld [vmem:[%s2137_s7 + $0x20] sm:$0xff] }
  0x45   : > { %464 = vperm.xlu0 %1538, %v454_v29   ;;  %v926_v41 = vld [vmem:[%s2137_s7 + $0x18] sm:$0xff]  ;;  %p1573_p6 = pneg %p1572_p0 }
  0x46   : > { %1387 = vmatmul.mubr.msk.f32.vlgmr.msra.gmra.mrb[0].mxu0 %vm477_vm0, %v449_v28  ;;  %474 = vperm.xlu1 %1539, %v456_v30  }
  0x47   : > { %1391 = vmatmul.mubr.msk.f32.vlgmr.msra.gmra.mrb[0].mxu1 %vm477_vm0, %v449_v28  ;;  %560 = vmatprep.mubr.f32.mxu0 %v1657_v0 }
  0x48   : > { %649 = vmatprep.mubr.f32.mxu1 %v1657_v0 }
  0x49   : > { %694 = vperm.xlu0 %1538, %v688_v32  }
  0x4a   : > { %1388 = vmatmul.mubr.msk.f32.gmra.mrb[2].mxu0 %vm477_vm0, %v450_v31  ;;  %699 = vperm.xlu1 %1539, %v689_v33  }
  0x4b   : > { %1392 = vmatmul.mubr.msk.f32.gmra.mrb[2].mxu1 %vm477_vm0, %v450_v31  ;;  %566 = vmatprep.mubr.f32.mxu0 %v1657_v0 }
  0x4c   : > { %655 = vmatprep.mubr.f32.mxu1 %v1657_v0 }
  0x4d   : > { %704 = vperm.xlu0 %1538, %v690_v35  }
  0x4e   : > { %1389 = vmatmul.mubr.msk.f32.gmra.mrb[4].mxu0 %vm477_vm0, %v451_v34  ;;  %709 = vperm.xlu1 %1539, %v691_v36  }
  0x4f   : > { %1393 = vmatmul.mubr.msk.f32.gmra.mrb[4].mxu1 %vm477_vm0, %v451_v34  ;;  %572 = vmatprep.mubr.f32.mxu0 %v1657_v0 }
  0x50   : > { %661 = vmatprep.mubr.f32.mxu1 %v1657_v0 }
  0x51   : > { %930 = vperm.xlu0 %1538, %v923_v38  }
  0x52   : > { %1390 = vmatmul.mubr.msk.f32.gmra.mrb[6].mxu0 %vm477_vm0, %v452_v37  ;;  %935 = vperm.xlu1 %1539, %v924_v39  }
  0x53   : > { %1394 = vmatmul.mubr.msk.f32.gmra.mrb[6].mxu1 %vm477_vm0, %v452_v37  ;;  %788 = vmatprep.mubr.f32.mxu0 %v1657_v0 }
  0x54   : > { %877 = vmatprep.mubr.f32.mxu1 %v1657_v0 }
  0x55   : > { %940 = vperm.xlu0 %1538, %v925_v40  }
  0x56   : > { %945 = vperm.xlu1 %1539, %v926_v41  }
  0x59   : > { %950 = vperm.xlu0 %1538, %v927_v42  }
  0xc0   : > { %v460_v43 = vpop.permute.xlu0 %459 }
  0xc1   : > { %v470_v57 = vpop.permute.xlu1 %469 }
  0xc4   : > { %v465_v49 = vpop.permute.xlu0 %464 }
  0xc5   : > { %v475_v32 = vpop.permute.xlu1 %474 }
 0x119   : > { %v556_v44 = vpop.f32.mrb[0].mxu0 }
 0x11a   : > { %v645_v45 = vpop.f32.mrb[0].mxu1  ;;  %v558_v46 = vpop.f32.mrb[1].mxu0  ;;  %v557_v48 = vadd.f32 %v556_v44, %v460_v43 }
 0x11b   : > { %v647_v47 = vpop.f32.mrb[1].mxu1  ;;  %v646_v50 = vadd.f32 %v645_v45, %v460_v43  ;;  %v559_v51 = vadd.f32 %v558_v46, %v460_v43 }
 0x11c   : > { %v648_v53 = vadd.f32 %v647_v47, %v460_v43  ;;  %v668_v61 = vmax.f32 %v557_v48, 0.0 }
 0x11d   : > { %v562_v52 = vpop.f32.mrb[2].mxu0  ;;  %v670_v1 = vmax.f32 %v646_v50, 0.0  ;;  %v669_v5 = vmax.f32 %v559_v51, 0.0 }
 0x11e   : > { %v563_v54 = vadd.f32 %v562_v52, %v465_v49  ;;  %v651_v55 = vpop.f32.mrb[2].mxu1  ;;  %v564_v56 = vpop.f32.mrb[3].mxu0  ;;  %v671_v18 = vmax.f32 %v648_v53, 0.0 }
 0x11f   : > { %v652_v58 = vadd.f32 %v651_v55, %v465_v49  ;;  %v565_v59 = vadd.f32 %v564_v56, %v465_v49  ;;  %v653_v60 = vpop.f32.mrb[3].mxu1  ;;  %v684_v56 = vld [vmem:[%s2134_s4] sm:$0xff] }
 0x120   : > { %v672_v62 = vmax.f32 %v563_v54, 0.0  ;;  %v654_v63 = vadd.f32 %v653_v60, %v465_v49 }
 0x121   : > { %v674_v9 = vmax.f32 %v652_v58, 0.0  ;;  %v673_v10 = vmax.f32 %v565_v59, 0.0  ;;  %v568_v14 = vpop.f32.mrb[4].mxu0  ;;  %v686_v58 = vld [vmem:[%s2134_s4 + $0x10] sm:$0xff]  ;;  %v687_v59 = vld [vmem:[%s2134_s4 + $0x18] sm:$0xff] }
 0x122   : > { %v1440_v19 = vpack.c.bf16 %v672_v62, %v668_v61  ;;  %v675_v23 = vmax.f32 %v654_v63, 0.0  ;;  %v657_v25 = vpop.f32.mrb[4].mxu1  ;;  %v570_v26 = vpop.f32.mrb[5].mxu0  ;;  %v569_v31 = vadd.f32 %v568_v14, %v470_v57 }
 0x123   : > { %v1448_v27 = vpack.c.bf16 %v674_v9, %v670_v1  ;;  %v1438_v28 = vpack.c.bf16 %v673_v10, %v669_v5  ;;  %v659_v29 = vpop.f32.mrb[5].mxu1  ;;  %v658_v33 = vadd.f32 %v657_v25, %v470_v57  ;;  %v571_v34 = vadd.f32 %v570_v26, %v470_v57  ;;  %v695_v63 = vpop.permute.xlu0 %694 }
 0x124   : > { %v1446_v30 = vpack.c.bf16 %v675_v23, %v671_v18  ;;  %v660_v36 = vadd.f32 %v659_v29, %v470_v57  ;;  %v676_v43 = vmax.f32 %v569_v31, 0.0  ;;  %v685_v57 = vld [vmem:[%s2134_s4 + $0x8] sm:$0xff]  ;;  %v700_v9 = vpop.permute.xlu1 %699 }
 0x125   : > { %v574_v35 = vpop.f32.mrb[6].mxu0  ;;  %1439 = vmatprep.subr.bf16.mxu0 %v1438_v28  ;;  %v678_v46 = vmax.f32 %v658_v33, 0.0  ;;  %v677_v47 = vmax.f32 %v571_v34, 0.0 }
 0x126   : > { %v575_v37 = vadd.f32 %v574_v35, %v475_v32  ;;  %v663_v38 = vpop.f32.mrb[6].mxu1  ;;  %1447 = vmatprep.subr.bf16.mxu1 %v1446_v30  ;;  %v576_v39 = vpop.f32.mrb[7].mxu0  ;;  %1441 = vmatpush1.bf16.msra.mxu0 %v1440_v19  ;;  %v679_v50 = vmax.f32 %v660_v36, 0.0 }
 0x127   : > { %v664_v40 = vadd.f32 %v663_v38, %v475_v32  ;;  %v577_v41 = vadd.f32 %v576_v39, %v475_v32  ;;  %v665_v42 = vpop.f32.mrb[7].mxu1  ;;  %1449 = vmatpush1.bf16.msra.mxu1 %v1448_v27 }
 0x128   : > { %v680_v44 = vmax.f32 %v575_v37, 0.0  ;;  %v666_v45 = vadd.f32 %v665_v42, %v475_v32 }
 0x129   : > { %v682_v48 = vmax.f32 %v664_v40, 0.0  ;;  %v681_v49 = vmax.f32 %v577_v41, 0.0 }
 0x12a   : > { %v1444_v51 = vpack.c.bf16 %v680_v44, %v676_v43  ;;  %v683_v52 = vmax.f32 %v666_v45, 0.0  ;;  %v705_v43 = vpop.permute.xlu0 %704 }
 0x12b   : > { %v1452_v53 = vpack.c.bf16 %v682_v48, %v678_v46  ;;  %v1442_v54 = vpack.c.bf16 %v681_v49, %v677_v47  ;;  %v710_v49 = vpop.permute.xlu1 %709 }
 0x12c   : > { %v1450_v55 = vpack.c.bf16 %v683_v52, %v679_v50 }
 0x12d   : > { %1443 = vmatprep.subr.bf16.mxu0 %v1442_v54 }
 0x12e   : > { %1451 = vmatprep.subr.bf16.mxu1 %v1450_v55  ;;  %1445 = vmatpush1.bf16.msra.mxu0 %v1444_v51 }
 0x12f   : > { %1453 = vmatpush1.bf16.msra.mxu1 %v1452_v53 }
 0x131   : > { %1395 = vmatmul.mubr.msk.f32.vlgmr.msra.gmra.mrb[8].mxu0 %vm477_vm0, %v684_v56 }
 0x132   : > { %1399 = vmatmul.mubr.msk.f32.vlgmr.msra.gmra.mrb[8].mxu1 %vm477_vm0, %v684_v56  ;;  %794 = vmatprep.mubr.f32.mxu0 %v1657_v0 }
 0x133   : > { %883 = vmatprep.mubr.f32.mxu1 %v1657_v0 }
 0x135   : > { %1396 = vmatmul.mubr.msk.f32.gmra.mrb[10].mxu0 %vm477_vm0, %v685_v57 }
 0x136   : > { %1400 = vmatmul.mubr.msk.f32.gmra.mrb[10].mxu1 %vm477_vm0, %v685_v57  ;;  %800 = vmatprep.mubr.f32.mxu0 %v1657_v0 }
 0x137   : > { %889 = vmatprep.mubr.f32.mxu1 %v1657_v0 }
 0x139   : > { %1397 = vmatmul.mubr.msk.f32.gmra.mrb[12].mxu0 %vm477_vm0, %v686_v58 }
 0x13a   : > { %1401 = vmatmul.mubr.msk.f32.gmra.mrb[12].mxu1 %vm477_vm0, %v686_v58  ;;  %806 = vmatprep.mubr.f32.mxu0 %v1657_v0 }
 0x13b   : > { %895 = vmatprep.mubr.f32.mxu1 %v1657_v0 }
 0x13d   : > { %1398 = vmatmul.mubr.msk.f32.gmra.mrb[14].mxu0 %vm477_vm0, %v687_v59 }
 0x13e   : > { %1402 = vmatmul.mubr.msk.f32.gmra.mrb[14].mxu1 %vm477_vm0, %v687_v59  ;;  %1032 = vmatprep.mubr.f32.mxu0 %v1657_v0 }
 0x13f   : > { %1127 = vmatprep.mubr.f32.mxu1 %v1657_v0 }
 0x204   : > { %v790_v60 = vpop.f32.mrb[8].mxu0 }
 0x205   : > { %v879_v61 = vpop.f32.mrb[8].mxu1  ;;  %v792_v62 = vpop.f32.mrb[9].mxu0  ;;  %v791_v5 = vadd.f32 %v790_v60, %v695_v63 }
 0x206   : > { %v881_v1 = vpop.f32.mrb[9].mxu1  ;;  %v880_v10 = vadd.f32 %v879_v61, %v695_v63  ;;  %v793_v14 = vadd.f32 %v792_v62, %v695_v63 }
 0x207   : > { %v882_v19 = vadd.f32 %v881_v1, %v695_v63  ;;  %v902_v30 = vmax.f32 %v791_v5, 0.0 }
 0x208   : > { %v796_v18 = vpop.f32.mrb[10].mxu0  ;;  %v904_v33 = vmax.f32 %v880_v10, 0.0  ;;  %v903_v34 = vmax.f32 %v793_v14, 0.0 }
 0x209   : > { %v797_v23 = vadd.f32 %v796_v18, %v700_v9  ;;  %v885_v25 = vpop.f32.mrb[10].mxu1  ;;  %v798_v26 = vpop.f32.mrb[11].mxu0  ;;  %v905_v38 = vmax.f32 %v882_v19, 0.0 }
 0x20a   : > { %v886_v27 = vadd.f32 %v885_v25, %v700_v9  ;;  %v799_v28 = vadd.f32 %v798_v26, %v700_v9  ;;  %v887_v29 = vpop.f32.mrb[11].mxu1  ;;  %v918_v26 = vld [vmem:[%s2136_s6] sm:$0xff] }
 0x20b   : > { %v906_v31 = vmax.f32 %v797_v23, 0.0  ;;  %v888_v32 = vadd.f32 %v887_v29, %v700_v9  ;;  %v921_v29 = vld [vmem:[%s2136_s6 + $0x18] sm:$0xff] }
 0x20c   : > { %v908_v35 = vmax.f32 %v886_v27, 0.0  ;;  %v907_v36 = vmax.f32 %v799_v28, 0.0  ;;  %v802_v37 = vpop.f32.mrb[12].mxu0  ;;  %v919_v27 = vld [vmem:[%s2136_s6 + $0x8] sm:$0xff]  ;;  %v920_v28 = vld [vmem:[%s2136_s6 + $0x10] sm:$0xff] }
 0x20d   : > { %v1456_v39 = vpack.c.bf16 %v906_v31, %v902_v30  ;;  %v909_v40 = vmax.f32 %v888_v32, 0.0  ;;  %v891_v41 = vpop.f32.mrb[12].mxu1  ;;  %v804_v42 = vpop.f32.mrb[13].mxu0  ;;  %v803_v48 = vadd.f32 %v802_v37, %v705_v43  ;;  %v922_v30 = vld [vmem:[%s2136_s6 + $0x20] sm:$0xff] }
 0x20e   : > { %v1464_v44 = vpack.c.bf16 %v908_v35, %v904_v33  ;;  %v1454_v45 = vpack.c.bf16 %v907_v36, %v903_v34  ;;  %v893_v46 = vpop.f32.mrb[13].mxu1  ;;  %v892_v50 = vadd.f32 %v891_v41, %v705_v43  ;;  %v805_v51 = vadd.f32 %v804_v42, %v705_v43  ;;  %v931_v31 = vpop.permute.xlu0 %930  ;;  %v448_v42 = vld [vmem:[%s417_s27 + $0x8] sm:$0x77] }
 0x20f   : > { %v1462_v47 = vpack.c.bf16 %v909_v40, %v905_v38  ;;  %v894_v53 = vadd.f32 %v893_v46, %v705_v43  ;;  %v910_v60 = vmax.f32 %v803_v48, 0.0  ;;  %v936_v40 = vpop.permute.xlu1 %935 }
 0x210   : > { %v808_v52 = vpop.f32.mrb[14].mxu0  ;;  %1455 = vmatprep.subr.bf16.mxu0 %v1454_v45  ;;  %v912_v63 = vmax.f32 %v892_v50, 0.0  ;;  %v911_v1 = vmax.f32 %v805_v51, 0.0 }
 0x211   : > { %v809_v54 = vadd.f32 %v808_v52, %v710_v49  ;;  %v897_v55 = vpop.f32.mrb[14].mxu1  ;;  %1463 = vmatprep.subr.bf16.mxu1 %v1462_v47  ;;  %v810_v56 = vpop.f32.mrb[15].mxu0  ;;  %1457 = vmatpush1.bf16.msra.mxu0 %v1456_v39  ;;  %v913_v10 = vmax.f32 %v894_v53, 0.0 }
 0x212   : > { %v898_v57 = vadd.f32 %v897_v55, %v710_v49  ;;  %v811_v58 = vadd.f32 %v810_v56, %v710_v49  ;;  %v899_v59 = vpop.f32.mrb[15].mxu1  ;;  %1465 = vmatpush1.bf16.msra.mxu1 %v1464_v44  ;;  %v941_v55 = vpop.permute.xlu0 %940 }
 0x213   : > { %v914_v61 = vmax.f32 %v809_v54, 0.0  ;;  %v900_v62 = vadd.f32 %v899_v59, %v710_v49 }
 0x214   : > { %v916_v5 = vmax.f32 %v898_v57, 0.0  ;;  %v915_v9 = vmax.f32 %v811_v58, 0.0 }
 0x215   : > { %v1460_v14 = vpack.c.bf16 %v914_v61, %v910_v60  ;;  %v917_v18 = vmax.f32 %v900_v62, 0.0 }
 0x216   : > { %v1468_v19 = vpack.c.bf16 %v916_v5, %v912_v63  ;;  %v1458_v23 = vpack.c.bf16 %v915_v9, %v911_v1  ;;  %v946_v5 = vpop.permute.xlu1 %945 }
 0x217   : > { %v1466_v25 = vpack.c.bf16 %v917_v18, %v913_v10 }
 0x218   : > { %1459 = vmatprep.subr.bf16.mxu0 %v1458_v23 }
 0x219   : > { %1467 = vmatprep.subr.bf16.mxu1 %v1466_v25  ;;  %1461 = vmatpush1.bf16.msra.mxu0 %v1460_v14 }
 0x21a   : > { %1469 = vmatpush1.bf16.msra.mxu1 %v1468_v19 }
 0x21c   : > { %1403 = vmatmul.mubr.msk.f32.vlgmr.msra.gmra.mrb[16].mxu0 %vm477_vm0, %v918_v26 }
 0x21d   : > { %1408 = vmatmul.mubr.msk.f32.vlgmr.msra.gmra.mrb[16].mxu1 %vm477_vm0, %v918_v26  ;;  %1038 = vmatprep.mubr.f32.mxu0 %v1657_v0 }
 0x21e   : > { %1133 = vmatprep.mubr.f32.mxu1 %v1657_v0 }
 0x220   : > { %1404 = vmatmul.mubr.msk.f32.gmra.mrb[18].mxu0 %vm477_vm0, %v919_v27 }
 0x221   : > { %1409 = vmatmul.mubr.msk.f32.gmra.mrb[18].mxu1 %vm477_vm0, %v919_v27  ;;  %1044 = vmatprep.mubr.f32.mxu0 %v1657_v0  ;;  %v951_v27 = vpop.permute.xlu0 %950 }
 0x222   : > { %1139 = vmatprep.mubr.f32.mxu1 %v1657_v0 }
 0x224   : > { %1405 = vmatmul.mubr.msk.f32.gmra.mrb[20].mxu0 %vm477_vm0, %v920_v28 }
 0x225   : > { %1410 = vmatmul.mubr.msk.f32.gmra.mrb[20].mxu1 %vm477_vm0, %v920_v28  ;;  %1050 = vmatprep.mubr.f32.mxu0 %v1657_v0 }
 0x226   : > { %1145 = vmatprep.mubr.f32.mxu1 %v1657_v0 }
 0x228   : > { %1406 = vmatmul.mubr.msk.f32.gmra.mrb[22].mxu0 %vm477_vm0, %v921_v29 }
 0x229   : > { %1411 = vmatmul.mubr.msk.f32.gmra.mrb[22].mxu1 %vm477_vm0, %v921_v29  ;;  %1056 = vmatprep.mubr.f32.mxu0 %v1657_v0 }
 0x22a   : > { %1151 = vmatprep.mubr.f32.mxu1 %v1657_v0  ;;  %v447_v0 = vld [vmem:[%s417_s27] sm:$0x77]  ;;  %s1659_s27 = smov [#allocation5]  }
 0x22b   : > { %s1574_s19 = sshll.u32 %s1659_s27, 4  ;;  %s1575_s19 = int_to_ptr.vmem [resolvable:$false] %s1574_s19 }
 0x22c   : > { %1407 = vmatmul.mubr.msk.f32.gmra.mrb[24].mxu0 %vm477_vm0, %v922_v30  ;;  %s1576_s26 = scalar_lea.vmem %s1575_s19, 4096  ;;  %p1577_p13 = scmp.lt.s32.totalorder %s2076_s21, %s1575_s19 }
 0x22d   : > { %1412 = vmatmul.mubr.msk.f32.gmra.mrb[24].mxu1 %vm477_vm0, %v922_v30  ;;  %p1578_p2 = scmp.lt.s32.totalorder %s1576_s26, %s1570_s29 }
 0x22f   : > { %p1579_p5 = por %p1578_p2, %p1577_p13 }
 0x231   : > { %p1580_p4 = pnand %p1579_p5, %p1573_p6 }
 0x2ef   : > { %v1034_v32 = vpop.f32.mrb[16].mxu0 }
 0x2f0   : > { %v1035_v33 = vadd.f32 %v1034_v32, %v931_v31  ;;  %v1129_v34 = vpop.f32.mrb[16].mxu1  ;;  %v1036_v35 = vpop.f32.mrb[17].mxu0 }
 0x2f1   : > { %v1130_v36 = vadd.f32 %v1129_v34, %v931_v31  ;;  %v1037_v37 = vadd.f32 %v1036_v35, %v931_v31  ;;  %v1131_v38 = vpop.f32.mrb[17].mxu1 }
 0x2f2   : > { %v1132_v39 = vadd.f32 %v1131_v38, %v931_v31 }
 0x2f3   : > { %v1162_v41 = vcombine.low %v1035_v33, %v1037_v37  ;;  %v1040_v43 = vpop.f32.mrb[18].mxu0 }
 0x2f4   : > { %v1163_v44 = vcombine.low %v1130_v36, %v1132_v39  ;;  %v1041_v45 = vadd.f32 %v1040_v43, %v936_v40  ;;  %v1135_v46 = vpop.f32.mrb[18].mxu1  ;;  %v1042_v47 = vpop.f32.mrb[19].mxu0 }
 0x2f5   : > { %v1166_v48 = vadd.f32 %v1162_v41, %v447_v0  ;;  %v1136_v49 = vadd.f32 %v1135_v46, %v936_v40  ;;  %v1043_v50 = vadd.f32 %v1042_v47, %v936_v40  ;;  %v1137_v51 = vpop.f32.mrb[19].mxu1 }
 0x2f6   : > { %v1167_v52 = vadd.f32 %v1163_v44, %v448_v42  ;;  %v1170_v53 = vadd.f32 %v1041_v45, %v1853_v7  ;;  %v1138_v54 = vadd.f32 %v1137_v51, %v936_v40 }
 0x2f7   : > { %1168 = vst [vmem:[%s428_s28] sm:$0x77] %v1166_v48  ;;  %v1172_v56 = vadd.f32 %v1136_v49, %v1863_v11  ;;  %v1171_v57 = vadd.f32 %v1043_v50, %v1839_v2  ;;  %v1046_v58 = vpop.f32.mrb[20].mxu0 }
 0x2f8   : > { %1169 = vst [vmem:[%s428_s28 + $0x8] sm:$0x77] %v1167_v52  ;;  %1186 = vst [vmem:[%s2043_s17] sm:$0xff] %v1170_v53  ;;  %v1173_v59 = vadd.f32 %v1138_v54, %v1845_v4  ;;  %v1047_v7 = vadd.f32 %v1046_v58, %v941_v55  ;;  %v1141_v60 = vpop.f32.mrb[20].mxu1  ;;  %v1048_v61 = vpop.f32.mrb[21].mxu0 }
 0x2f9   : > { %1188 = vst [vmem:[%s2043_s17 + $0x10] sm:$0xff] %v1172_v56  ;;  %1187 = vst [vmem:[%s2043_s17 + $0x8] sm:$0xff] %v1171_v57  ;;  %v1142_v2 = vadd.f32 %v1141_v60, %v941_v55  ;;  %v1049_v11 = vadd.f32 %v1048_v61, %v941_v55  ;;  %v1143_v62 = vpop.f32.mrb[21].mxu1 }
 0x2fa   : > { %1189 = vst [vmem:[%s2043_s17 + $0x18] sm:$0xff] %v1173_v59  ;;  %v1174_v63 = vadd.f32 %v1047_v7, %v1856_v8  ;;  %v1144_v1 = vadd.f32 %v1143_v62, %v941_v55 }
 0x2fb   : > { %v1176_v9 = vadd.f32 %v1142_v2, %v1866_v12  ;;  %v1175_v4 = vadd.f32 %v1049_v11, %v1842_v3  ;;  %v1052_v10 = vpop.f32.mrb[22].mxu0 }
 0x2fc   : > { %1190 = vst [vmem:[%s2043_s17 + $0x20] sm:$0xff] %v1174_v63  ;;  %v1177_v14 = vadd.f32 %v1144_v1, %v1850_v6  ;;  %v1053_v18 = vadd.f32 %v1052_v10, %v946_v5  ;;  %v1147_v19 = vpop.f32.mrb[22].mxu1  ;;  %v1054_v23 = vpop.f32.mrb[23].mxu0 }
 0x2fd   : > { %1192 = vst [vmem:[%s2043_s17 + $0x30] sm:$0xff] %v1176_v9  ;;  %1191 = vst [vmem:[%s2043_s17 + $0x28] sm:$0xff] %v1175_v4  ;;  %v1148_v25 = vadd.f32 %v1147_v19, %v946_v5  ;;  %v1055_v8 = vadd.f32 %v1054_v23, %v946_v5  ;;  %v1149_v26 = vpop.f32.mrb[23].mxu1 }
 0x2fe   : > { %1193 = vst [vmem:[%s2043_s17 + $0x38] sm:$0xff] %v1177_v14  ;;  %v1178_v3 = vadd.f32 %v1053_v18, %v1887_v20  ;;  %v1150_v12 = vadd.f32 %v1149_v26, %v946_v5 }
 0x2ff   : > { %v1180_v6 = vadd.f32 %v1148_v25, %v1893_v22  ;;  %v1179_v28 = vadd.f32 %v1055_v8, %v1869_v13  ;;  %v1058_v29 = vpop.f32.mrb[24].mxu0 }
 0x300   : > { %1194 = vst [vmem:[%s2043_s17 + $0x40] sm:$0xff] %v1178_v3  ;;  %v1181_v30 = vadd.f32 %v1150_v12, %v1877_v16  ;;  %v1059_v31 = vadd.f32 %v1058_v29, %v951_v27  ;;  %v1153_v32 = vpop.f32.mrb[24].mxu1  ;;  %v1060_v33 = vpop.f32.mrb[25].mxu0 }
 0x301   : > { %1196 = vst [vmem:[%s2043_s17 + $0x50] sm:$0xff] %v1180_v6  ;;  %1195 = vst [vmem:[%s2043_s17 + $0x48] sm:$0xff] %v1179_v28  ;;  %v1154_v20 = vadd.f32 %v1153_v32, %v951_v27  ;;  %v1061_v22 = vadd.f32 %v1060_v33, %v951_v27  ;;  %v1155_v34 = vpop.f32.mrb[25].mxu1 }
 0x302   : > { %1197 = vst [vmem:[%s2043_s17 + $0x58] sm:$0xff] %v1181_v30  ;;  %v1182_v13 = vadd.f32 %v1059_v31, %v1890_v21  ;;  %v1156_v16 = vadd.f32 %v1155_v34, %v951_v27 }
 0x303   : > { %v1184_v35 = vadd.f32 %v1154_v20, %v1898_v24  ;;  %v1183_v36 = vadd.f32 %v1061_v22, %v1874_v15 }
 0x304   : > { %1198 = vst [vmem:[%s2043_s17 + $0x60] sm:$0xff] %v1182_v13  ;;  %v1185_v37 = vadd.f32 %v1156_v16, %v1880_v17 }
 0x305   : > { %1200 = vst [vmem:[%s2043_s17 + $0x70] sm:$0xff] %v1184_v35  ;;  %1199 = vst [vmem:[%s2043_s17 + $0x68] sm:$0xff] %v1183_v36 }
 0x306   : > { %1201 = vst [vmem:[%s2043_s17 + $0x78] sm:$0xff] %v1185_v37 }
 0x307   : > { %1583 = shalt.err (!%p1580_p4)
}
 0x308   : > { %s1584_s28 = scalar_lea.hbm %s2074_s18, 2048  ;;  %s1588_s12 = scalar_lea.hbm %s2139_s9, 4096 }
 0x309   : > { %p1585_p7 = scmp.ne.s32.totalorder %s2074_s18, %s1584_s28  ;;  %p1589_p1 = scmp.lt.u32.totalorder %s2074_s18, %s2139_s9 }
 0x30a   : > { %p1590_p3 = scmp.lt.u32.totalorder %s1588_s12, %s1584_s28  ;;  %p1592_p9 = scmp.lt.u32.totalorder %s1584_s28, %s2074_s18 }
 0x30b   : > { %p1586_p10 = pnand %p1585_p7, %p2149_p11 }
 0x30c   : > { %p1591_p8 = por %p1590_p3, %p1589_p1 }
 0x30d   : > { %p1587_p12 = pneg %p1586_p10 }
 0x30e   : > { %p1593_p0 = por %p1592_p9, %p1591_p8 }
 0x310   : > { %p1594_p6 = pnand %p1593_p0, %p1587_p12 }
 0x312   : > { %1597 = shalt.err (!%p1594_p6)
}
 0x313   : > { %s1660_s29 = smov 512   ;;  %s1661_s19 = smov 32  }
 0x314   : > { %1472 = dma.vmem_to_hbm [thread:$0]  (%p2149_p11), %s2076_s21, 2048, %s2074_s18, %s1212_s20, %s1660_s29, %s1660_s29, %s1661_s19  }
 0x315 PF: > { %s1258_s26 = sand.u32 1, %s1632_s30   ;;  %p2150_p13 = scmp.ne.s32.totalorder %s2146_s24, 0 }
 0x316   : > { %p2151_p2 = scmp.ge.s32.totalorder %s1652_s14, 2  ;;  %s1259_s28 = scalar_lea.sflag [#allocation4], %s1258_s26 }
 0x318   : > { %p1479_p5 = pnand %p2151_p2, %p2150_p13 }
 0x31a   : > { %1627 = dma.done.wait (!%p1479_p5), %s1259_s28, 2048  }
 0x31b   : > { %1629 = vsyncadd (!%p1479_p5), %s1259_s28, 4294965248  ;;  %s26_s14 = sadd.s32 1, %s1652_s14   ;;  %s2152_s22 = sld [smem:[#allocation8_spill]] }
 0x31c   : > { %p23_p4 = scmp.ge.s32.totalorder %s26_s14, 4   ;;  %s2153_s30 = smov %s1636_s10 }
 0x31d   : > { %s2154_s10 = smov %s1640_s11  ;;  %s2155_s11 = smov %s1768_s23 }
 0x31e   : > { %s2156_s12 = smov %s1648_s13  ;;  %25 = sbr.rel (!%p23_p4) target bundleno = 6 (0x6), region = 112 }
 0x321   : > { %s2157_s13 = smov %s2152_s22 }
 0x325   :  { %1264 = vsyncpa [#allocation3], 1 }
 0x326   :  { %1266 = vsyncpa [#allocation3 + $0x1], 1 }
 0x327   :  { %1267 = vsyncpa [#allocation4], 1 }
 0x328   :  { %1269 = vsyncpa [#allocation4 + $0x1], 1 }

</bundles_post_ra>
